<compile_context>
chip_gen: v7x
topology: tpu7x:2x2x1
jax: 0.10.0
libtpu: 0.0.40
codegen_flags: <defaults>
</compile_context>

<pallas_src>
import jax
import jax.numpy as jnp
import numpy as np
from jax.experimental import pallas as pl
from jax.experimental.pallas import tpu as pltpu

BN_EPS = 1e-5
_VMEM = pl.BlockSpec(memory_space=pltpu.MemorySpace.VMEM)


def _make_lenet_kernel(n):
    """Fused LeNet-5 forward kernel for a (static) batch size n."""

    def kernel(x_ref, m144_ref, m128_ref, vrow_ref, fea1_ref, fea2_ref, y_ref):
        f32 = jnp.float32
        x = x_ref[...]                                               # (n, 28, 28)

        # ---------------- conv1: single banded MXU matmul (K=140) ----------------
        xc1 = jnp.concatenate(
            [x[:, kh:kh + 24, :].reshape(n * 24, 28) for kh in range(5)], axis=-1)
        a1 = m144_ref[0:140, :]                                      # (140, 144)
        b1 = vrow_ref[0:1, 0:144]
        y1 = jnp.dot(xc1, a1, preferred_element_type=f32) + b1       # (n*24, 144) cols=c*24+w
        fea1_ref[...] = y1                                           # fealist[0] (pre-BN)

        # ---------------- BN1 (training batch stats) + ReLU ----------------
        blk1 = m144_ref[144:288, :]                                  # per-channel mean matrix (x 1/cnt)
        cs1 = jnp.sum(y1, axis=0, keepdims=True)                     # (1, 144)
        cq1 = jnp.sum(y1 * y1, axis=0, keepdims=True)
        mean1 = jnp.dot(cs1, blk1, preferred_element_type=f32)       # per-channel, broadcast per lane
        ex2_1 = jnp.dot(cq1, blk1, preferred_element_type=f32)
        var1 = jnp.maximum(ex2_1 - mean1 * mean1, 0.0)
        sc1 = vrow_ref[1:2, 0:144] * jax.lax.rsqrt(var1 + BN_EPS)
        sh1 = vrow_ref[2:3, 0:144] - mean1 * sc1
        r1 = jnp.maximum(y1 * sc1 + sh1, 0.0)                        # (n*24, 144)

        # ---------------- maxpool 2x2: h-pairs via sublane split, w-pairs via MXU select ----------------
        t1 = r1.reshape(n * 12, 2, 144)
        hm1 = jnp.maximum(t1[:, 0, :], t1[:, 1, :])                  # (n*12, 144)
        p1 = jnp.maximum(
            jnp.dot(hm1, m144_ref[288:432, 0:72], preferred_element_type=f32),
            jnp.dot(hm1, m144_ref[432:576, 0:72], preferred_element_type=f32))   # (n*12, 72) cols=c*12+wp

        # ---------------- conv2: single banded MXU matmul (K=360, 128 dense out lanes) ----------------
        pm = p1.reshape(n, 12, 72)
        xc2 = jnp.concatenate(
            [pm[:, kh:kh + 8, :].reshape(n * 8, 72) for kh in range(5)], axis=-1)    # (n*8, 360)
        a2 = m128_ref[0:360, :]
        b2 = vrow_ref[3:4, 0:128]
        y2 = jnp.dot(xc2, a2, preferred_element_type=f32) + b2       # (n*8, 128) cols=co*8+ow

        # ---------------- BN2 + fea2 (lane-dense, pre-ReLU) ----------------
        blk2 = m128_ref[360:488, :]
        cs2 = jnp.sum(y2, axis=0, keepdims=True)
        cq2 = jnp.sum(y2 * y2, axis=0, keepdims=True)
        mean2 = jnp.dot(cs2, blk2, preferred_element_type=f32)
        ex2_2 = jnp.dot(cq2, blk2, preferred_element_type=f32)
        var2 = jnp.maximum(ex2_2 - mean2 * mean2, 0.0)
        sc2 = vrow_ref[4:5, 0:128] * jax.lax.rsqrt(var2 + BN_EPS)
        sh2 = vrow_ref[5:6, 0:128] - mean2 * sc2
        y2bn = y2 * sc2 + sh2
        fea2_ref[...] = y2bn                                         # fealist[1]
        r2 = jnp.maximum(y2bn, 0.0)

        # ---------------- maxpool 2x2 ----------------
        t2 = r2.reshape(n * 4, 2, 128)
        hm2 = jnp.maximum(t2[:, 0, :], t2[:, 1, :])                  # (n*4, 128)
        p2 = jnp.maximum(
            jnp.dot(hm2, m128_ref[488:616, 0:64], preferred_element_type=f32),
            jnp.dot(hm2, m128_ref[616:744, 0:64], preferred_element_type=f32))   # (n*4, 64) cols=co*4+owp

        # ---------------- flatten + fused MLP (single K=256 fc1 dot; padded to 128 lanes) ----------------
        p2r = p2.reshape(n, 4, 64)
        flat = jnp.concatenate([p2r[:, j, :] for j in range(4)], axis=-1)         # (n, 256)
        h = jnp.maximum(jnp.dot(flat, m128_ref[744:1000, :], preferred_element_type=f32)
                        + vrow_ref[6:7, 0:128], 0.0)
        h = jnp.maximum(jnp.dot(h, m128_ref[1000:1128, :], preferred_element_type=f32)
                        + vrow_ref[7:8, 0:128], 0.0)
        h = jnp.maximum(jnp.dot(h, m128_ref[1128:1256, :], preferred_element_type=f32)
                        + vrow_ref[8:9, 0:128], 0.0)
        y_ref[...] = h

    return kernel


def init_params(key):
    ks = jax.random.split(key, 14)
    f32 = jnp.float32
    return {
        "conv1_w": 0.2 * jax.random.normal(ks[0], (6, 1, 5, 5), f32),
        "conv1_b": 0.1 * jax.random.normal(ks[1], (6,), f32),
        "bn1_g": 1.0 + 0.1 * jax.random.normal(ks[2], (6,), f32),
        "bn1_b": 0.1 * jax.random.normal(ks[3], (6,), f32),
        "conv2_w": 0.1 * jax.random.normal(ks[4], (16, 6, 5, 5), f32),
        "conv2_b": 0.1 * jax.random.normal(ks[5], (16,), f32),
        "bn2_g": 1.0 + 0.1 * jax.random.normal(ks[6], (16,), f32),
        "bn2_b": 0.1 * jax.random.normal(ks[7], (16,), f32),
        "fc1_w": 0.05 * jax.random.normal(ks[8], (120, 256), f32),
        "fc1_b": 0.05 * jax.random.normal(ks[9], (120,), f32),
        "fc2_w": 0.05 * jax.random.normal(ks[10], (84, 120), f32),
        "fc2_b": 0.05 * jax.random.normal(ks[11], (84,), f32),
        "fc3_w": 0.05 * jax.random.normal(ks[12], (11, 84), f32),
        "fc3_b": 0.05 * jax.random.normal(ks[13], (11,), f32),
    }


def lenet5v1_forward(x_nchw, params):
    n = x_nchw.shape[0]
    f32 = jnp.float32
    x = x_nchw.astype(f32)[:, 0, :, :]                               # (n, 28, 28)

    cnt1 = float(n * 24 * 24)                                        # BN1 element count / channel
    cnt2 = float(n * 8 * 8)                                          # BN2 element count / channel

    w1 = params["conv1_w"].astype(f32)
    w2 = params["conv2_w"].astype(f32)

    # -------- m144 pack: [A1 | blk1 | sel1_even | sel1_odd], each 144 rows --------
    # A1: banded conv1 weights. A1[kh*28 + w + kw, c*24 + w] = W1[c,0,kh,kw]
    c_i, kh_i, kw_i, wo_i = np.meshgrid(np.arange(6), np.arange(5), np.arange(5),
                                        np.arange(24), indexing="ij")
    a1 = jnp.zeros((144, 144), f32).at[
        (kh_i * 28 + wo_i + kw_i).ravel(),
        (c_i * 24 + wo_i).ravel()].set(w1[c_i, 0, kh_i, kw_i].ravel())
    ch1 = np.repeat(np.arange(6), 24)
    blk1 = jnp.asarray((ch1[:, None] == ch1[None, :]).astype(np.float32) / cnt1)
    s1e = np.zeros((144, 144), np.float32)
    s1o = np.zeros((144, 144), np.float32)
    c_j, wp_j = np.meshgrid(np.arange(6), np.arange(12), indexing="ij")
    s1e[c_j * 24 + 2 * wp_j, c_j * 12 + wp_j] = 1.0
    s1o[c_j * 24 + 2 * wp_j + 1, c_j * 12 + wp_j] = 1.0
    m144 = jnp.concatenate([a1, blk1, jnp.asarray(s1e), jnp.asarray(s1o)], axis=0)   # (576, 144)

    # -------- m128 pack: [A2 | blk2 | sel2_even | sel2_odd | fc1 | fc2 | fc3] --------
    # A2: banded conv2 weights. A2[kh*72 + ci*12 + ow + kw, co*8 + ow] = W2[co,ci,kh,kw]
    co_i, ci_i, kh2_i, kw2_i, ow_i = np.meshgrid(np.arange(16), np.arange(6), np.arange(5),
                                                 np.arange(5), np.arange(8), indexing="ij")
    a2 = jnp.zeros((360, 128), f32).at[
        (kh2_i * 72 + ci_i * 12 + ow_i + kw2_i).ravel(),
        (co_i * 8 + ow_i).ravel()].set(w2[co_i, ci_i, kh2_i, kw2_i].ravel())
    ch2 = np.repeat(np.arange(16), 8)
    blk2 = jnp.asarray((ch2[:, None] == ch2[None, :]).astype(np.float32) / cnt2)
    s2e = np.zeros((128, 128), np.float32)
    s2o = np.zeros((128, 128), np.float32)
    co_j, op_j = np.meshgrid(np.arange(16), np.arange(4), indexing="ij")
    s2e[co_j * 8 + 2 * op_j, co_j * 4 + op_j] = 1.0
    s2o[co_j * 8 + 2 * op_j + 1, co_j * 4 + op_j] = 1.0
    # fc1 weight with the kernel's flatten order (ohp, co, owp) absorbed; widths padded to 128.
    fw1 = jnp.transpose(params["fc1_w"].astype(f32).reshape(120, 16, 4, 4),
                        (2, 1, 3, 0)).reshape(256, 120)
    fw1 = jnp.pad(fw1, ((0, 0), (0, 8)))
    fw2 = jnp.pad(params["fc2_w"].astype(f32).T, ((0, 8), (0, 44)))
    fw3 = jnp.pad(params["fc3_w"].astype(f32).T, ((0, 44), (0, 117)))
    m128 = jnp.concatenate([a2, blk2, jnp.asarray(s2e), jnp.asarray(s2o), fw1, fw2, fw3],
                           axis=0)                                                    # (1256, 128)

    # -------- vrow pack: biases / BN affine rows, each padded to 256 lanes --------
    def row(v):
        v = v.astype(f32)
        return jnp.pad(v, (0, 256 - v.shape[0])).reshape(1, 256)

    vrow = jnp.concatenate([
        row(jnp.repeat(params["conv1_b"], 24)),   # 0: conv1 bias per (c,w) col
        row(jnp.repeat(params["bn1_g"], 24)),     # 1: BN1 gamma
        row(jnp.repeat(params["bn1_b"], 24)),     # 2: BN1 beta
        row(jnp.repeat(params["conv2_b"], 8)),    # 3: conv2 bias per (co,ow) col
        row(jnp.repeat(params["bn2_g"], 8)),      # 4: BN2 gamma
        row(jnp.repeat(params["bn2_b"], 8)),      # 5: BN2 beta
        row(params["fc1_b"]),                     # 6
        row(params["fc2_b"]),                     # 7
        row(params["fc3_b"]),                     # 8
    ], axis=0)                                                                        # (9, 256)

    kernel = _make_lenet_kernel(n)
    fea1_raw, fea2_raw, y_full = pl.pallas_call(
        kernel,
        out_shape=(
            jax.ShapeDtypeStruct((n * 24, 144), f32),   # fea1: rows (i,h), cols (c,w)
            jax.ShapeDtypeStruct((n * 8, 128), f32),    # fea2: rows (i,oh), cols (co,ow)
            jax.ShapeDtypeStruct((n, 128), f32),        # logits padded to 128
        ),
        in_specs=[_VMEM] * 4,
        out_specs=(_VMEM, _VMEM, _VMEM),
        compiler_params=pltpu.CompilerParams(vmem_limit_bytes=48 * 1024 * 1024),
    )(x, m144, m128, vrow)

    y = y_full[:, :11]
    fea1 = jnp.transpose(fea1_raw.reshape(n, 24, 6, 24), (0, 2, 1, 3))   # (N, 6, 24, 24)
    fea2 = jnp.transpose(fea2_raw.reshape(n, 8, 16, 8), (0, 2, 1, 3))    # (N, 16, 8, 8)
    return y, [fea1, fea2]


def _reference_forward(x_nchw, params):
    """Pure-XLA reference of the same module (training-mode BN), for validation."""
    f32 = jnp.float32
    hi = jax.lax.Precision.HIGHEST
    x = x_nchw.astype(f32)

    def conv(v, w, b):
        y = jax.lax.conv_general_dilated(
            v, w.astype(f32), (1, 1), "VALID",
            dimension_numbers=("NCHW", "OIHW", "NCHW"), precision=hi)
        return y + b.reshape(1, -1, 1, 1)

    def bn(v, g, b):
        m = v.mean(axis=(0, 2, 3), keepdims=True)
        s = v.var(axis=(0, 2, 3), keepdims=True)
        return ((v - m) * jax.lax.rsqrt(s + BN_EPS) * g.reshape(1, -1, 1, 1)
                + b.reshape(1, -1, 1, 1))

    def pool(v):
        nb, c, h, w = v.shape
        return v.reshape(nb, c, h // 2, 2, w // 2, 2).max(axis=(3, 5))

    fealist = []
    y = conv(x, params["conv1_w"], params["conv1_b"]); fealist.append(y)
    y = pool(jnp.maximum(bn(y, params["bn1_g"], params["bn1_b"]), 0.0))
    y = conv(y, params["conv2_w"], params["conv2_b"])
    y = bn(y, params["bn2_g"], params["bn2_b"]); fealist.append(y)
    y = pool(jnp.maximum(y, 0.0))
    y = y.reshape(y.shape[0], -1)
    y = jnp.maximum(jnp.dot(y, params["fc1_w"].T, precision=hi) + params["fc1_b"], 0.0)
    y = jnp.maximum(jnp.dot(y, params["fc2_w"].T, precision=hi) + params["fc2_b"], 0.0)
    y = jnp.maximum(jnp.dot(y, params["fc3_w"].T, precision=hi) + params["fc3_b"], 0.0)
    return y, fealist


if __name__ == "__main__":
    key = jax.random.PRNGKey(0)
    k_params, k_x = jax.random.split(key)
    params = init_params(k_params)
    # fc1 in_features = 256 = 16*4*4  ->  input must be 1x28x28
    x = jax.random.normal(k_x, (2, 1, 28, 28), jnp.float32)

    fwd = jax.jit(lenet5v1_forward)
    y, fealist = fwd(x, params)
    jax.block_until_ready((y, fealist))

    assert y.shape == (2, 11)
    assert fealist[0].shape == (2, 6, 24, 24)
    assert fealist[1].shape == (2, 16, 8, 8)
    assert bool(jnp.all(jnp.isfinite(y)))
    assert bool(jnp.all(jnp.isfinite(fealist[0])))
    assert bool(jnp.all(jnp.isfinite(fealist[1])))

    # Cross-check against a plain XLA implementation of the same module
    # (loose tolerance to allow for MXU matmul precision differences).
    y_ref, fea_ref = _reference_forward(x, params)
    assert bool(jnp.allclose(fealist[0], fea_ref[0], atol=1e-1, rtol=1e-1))
    assert bool(jnp.allclose(fealist[1], fea_ref[1], atol=1e-1, rtol=1e-1))
    assert bool(jnp.allclose(y, y_ref, atol=1e-1, rtol=1e-1))

    print("KERNEL_OK")
</pallas_src>

<mosaic_0001>
module attributes {stable_mosaic.version = 11 : i64} {
  func.func @kernel(%arg0: memref<2x28x28xf32, #tpu.memory_space<vmem>>, %arg1: memref<576x144xf32, #tpu.memory_space<vmem>>, %arg2: memref<1256x128xf32, #tpu.memory_space<vmem>>, %arg3: memref<9x256xf32, #tpu.memory_space<vmem>>, %arg4: memref<48x144xf32, #tpu.memory_space<vmem>>, %arg5: memref<16x128xf32, #tpu.memory_space<vmem>>, %arg6: memref<2x128xf32, #tpu.memory_space<vmem>>) attributes {dimension_semantics = [], scalar_prefetch = 0 : i64, scratch_operands = 0 : i64, tpu.core_type = #tpu.core_type<tc>} {
    %c0 = arith.constant 0 : index
    %c0_0 = arith.constant 0 : index
    %c0_1 = arith.constant 0 : index
    %0 = vector.load %arg0[%c0, %c0_0, %c0_1] : memref<2x28x28xf32, #tpu.memory_space<vmem>>, vector<2x28x28xf32>
    %1 = vector.extract_strided_slice %0 {offsets = [0, 0, 0], sizes = [2, 24, 28], strides = [1, 1, 1]} : vector<2x28x28xf32> to vector<2x24x28xf32>
    %2 = vector.shape_cast %1 : vector<2x24x28xf32> to vector<48x28xf32>
    %3 = vector.extract_strided_slice %0 {offsets = [0, 1, 0], sizes = [2, 24, 28], strides = [1, 1, 1]} : vector<2x28x28xf32> to vector<2x24x28xf32>
    %4 = vector.shape_cast %3 : vector<2x24x28xf32> to vector<48x28xf32>
    %5 = vector.extract_strided_slice %0 {offsets = [0, 2, 0], sizes = [2, 24, 28], strides = [1, 1, 1]} : vector<2x28x28xf32> to vector<2x24x28xf32>
    %6 = vector.shape_cast %5 : vector<2x24x28xf32> to vector<48x28xf32>
    %7 = vector.extract_strided_slice %0 {offsets = [0, 3, 0], sizes = [2, 24, 28], strides = [1, 1, 1]} : vector<2x28x28xf32> to vector<2x24x28xf32>
    %8 = vector.shape_cast %7 : vector<2x24x28xf32> to vector<48x28xf32>
    %9 = vector.extract_strided_slice %0 {offsets = [0, 4, 0], sizes = [2, 24, 28], strides = [1, 1, 1]} : vector<2x28x28xf32> to vector<2x24x28xf32>
    %10 = vector.shape_cast %9 : vector<2x24x28xf32> to vector<48x28xf32>
    %11 = tpu.concatenate %2, %4, %6, %8, %10 in 1 : vector<48x28xf32>, vector<48x28xf32>, vector<48x28xf32>, vector<48x28xf32>, vector<48x28xf32> -> vector<48x140xf32>
    %c0_2 = arith.constant 0 : index
    %c0_3 = arith.constant 0 : index
    %12 = vector.load %arg1[%c0_2, %c0_3] : memref<576x144xf32, #tpu.memory_space<vmem>>, vector<140x144xf32>
    %c0_4 = arith.constant 0 : index
    %c0_5 = arith.constant 0 : index
    %13 = vector.load %arg3[%c0_4, %c0_5] : memref<9x256xf32, #tpu.memory_space<vmem>>, vector<1x144xf32>
    %cst = arith.constant dense<0.000000e+00> : vector<48x144xf32>
    %14 = tpu.matmul %11, %12, %cst {dimension_numbers = #tpu.dot_dimension_numbers<[1], [0], [0], [1], [0, 0, 1, 1], [], []>} : vector<48x140xf32>, vector<140x144xf32>, vector<48x144xf32> -> vector<48x144xf32>
    %15 = vector.broadcast %13 : vector<1x144xf32> to vector<48x144xf32>
    %16 = arith.addf %14, %15 : vector<48x144xf32>
    %c0_6 = arith.constant 0 : index
    %c0_7 = arith.constant 0 : index
    %17 = vector.load %arg4[%c0_6, %c0_7] : memref<48x144xf32, #tpu.memory_space<vmem>>, vector<48x144xf32>
    tpu.vector_store %arg4[%c0_6, %c0_7], %16 {strides = array<i32>} : memref<48x144xf32, #tpu.memory_space<vmem>>, vector<48x144xf32>,
    %c144 = arith.constant 144 : index
    %c0_8 = arith.constant 0 : index
    %18 = vector.load %arg1[%c144, %c0_8] : memref<576x144xf32, #tpu.memory_space<vmem>>, vector<144x144xf32>
    %cst_9 = arith.constant dense<0.000000e+00> : vector<144xf32>
    %19 = vector.multi_reduction <add>, %16, %cst_9 [0] : vector<48x144xf32> to vector<144xf32>
    %20 = vector.shape_cast %19 : vector<144xf32> to vector<1x144xf32>
    %21 = arith.mulf %16, %16 : vector<48x144xf32>
    %cst_10 = arith.constant dense<0.000000e+00> : vector<144xf32>
    %22 = vector.multi_reduction <add>, %21, %cst_10 [0] : vector<48x144xf32> to vector<144xf32>
    %23 = vector.shape_cast %22 : vector<144xf32> to vector<1x144xf32>
    %cst_11 = arith.constant dense<0.000000e+00> : vector<1x144xf32>
    %24 = tpu.matmul %20, %18, %cst_11 {dimension_numbers = #tpu.dot_dimension_numbers<[1], [0], [0], [1], [0, 0, 1, 1], [], []>} : vector<1x144xf32>, vector<144x144xf32>, vector<1x144xf32> -> vector<1x144xf32>
    %cst_12 = arith.constant dense<0.000000e+00> : vector<1x144xf32>
    %25 = tpu.matmul %23, %18, %cst_12 {dimension_numbers = #tpu.dot_dimension_numbers<[1], [0], [0], [1], [0, 0, 1, 1], [], []>} : vector<1x144xf32>, vector<144x144xf32>, vector<1x144xf32> -> vector<1x144xf32>
    %26 = arith.mulf %24, %24 : vector<1x144xf32>
    %27 = arith.subf %25, %26 : vector<1x144xf32>
    %cst_13 = arith.constant 0.000000e+00 : f32
    %28 = vector.broadcast %cst_13 : f32 to vector<1x144xf32>
    %29 = arith.maximumf %27, %28 : vector<1x144xf32>
    %c1 = arith.constant 1 : index
    %c0_14 = arith.constant 0 : index
    %30 = vector.load %arg3[%c1, %c0_14] : memref<9x256xf32, #tpu.memory_space<vmem>>, vector<1x144xf32>
    %cst_15 = arith.constant 9.99999974E-6 : f32
    %31 = vector.broadcast %cst_15 : f32 to vector<1x144xf32>
    %32 = arith.addf %29, %31 : vector<1x144xf32>
    %33 = math.rsqrt %32 : vector<1x144xf32>
    %34 = arith.mulf %30, %33 : vector<1x144xf32>
    %c2 = arith.constant 2 : index
    %c0_16 = arith.constant 0 : index
    %35 = vector.load %arg3[%c2, %c0_16] : memref<9x256xf32, #tpu.memory_space<vmem>>, vector<1x144xf32>
    %36 = arith.mulf %24, %34 : vector<1x144xf32>
    %37 = arith.subf %35, %36 : vector<1x144xf32>
    %38 = vector.broadcast %34 : vector<1x144xf32> to vector<48x144xf32>
    %39 = arith.mulf %16, %38 : vector<48x144xf32>
    %40 = vector.broadcast %37 : vector<1x144xf32> to vector<48x144xf32>
    %41 = arith.addf %39, %40 : vector<48x144xf32>
    %cst_17 = arith.constant 0.000000e+00 : f32
    %42 = vector.broadcast %cst_17 : f32 to vector<48x144xf32>
    %43 = arith.maximumf %41, %42 : vector<48x144xf32>
    %44 = vector.shape_cast %43 : vector<48x144xf32> to vector<24x2x144xf32>
    %45 = vector.extract_strided_slice %44 {offsets = [0, 0, 0], sizes = [24, 1, 144], strides = [1, 1, 1]} : vector<24x2x144xf32> to vector<24x1x144xf32>
    %46 = vector.shape_cast %45 : vector<24x1x144xf32> to vector<24x144xf32>
    %47 = vector.extract_strided_slice %44 {offsets = [0, 1, 0], sizes = [24, 1, 144], strides = [1, 1, 1]} : vector<24x2x144xf32> to vector<24x1x144xf32>
    %48 = vector.shape_cast %47 : vector<24x1x144xf32> to vector<24x144xf32>
    %49 = arith.maximumf %46, %48 : vector<24x144xf32>
    %c288 = arith.constant 288 : index
    %c0_18 = arith.constant 0 : index
    %50 = vector.load %arg1[%c288, %c0_18] : memref<576x144xf32, #tpu.memory_space<vmem>>, vector<144x72xf32>
    %cst_19 = arith.constant dense<0.000000e+00> : vector<24x72xf32>
    %51 = tpu.matmul %49, %50, %cst_19 {dimension_numbers = #tpu.dot_dimension_numbers<[1], [0], [0], [1], [0, 0, 1, 1], [], []>} : vector<24x144xf32>, vector<144x72xf32>, vector<24x72xf32> -> vector<24x72xf32>
    %c432 = arith.constant 432 : index
    %c0_20 = arith.constant 0 : index
    %52 = vector.load %arg1[%c432, %c0_20] : memref<576x144xf32, #tpu.memory_space<vmem>>, vector<144x72xf32>
    %cst_21 = arith.constant dense<0.000000e+00> : vector<24x72xf32>
    %53 = tpu.matmul %49, %52, %cst_21 {dimension_numbers = #tpu.dot_dimension_numbers<[1], [0], [0], [1], [0, 0, 1, 1], [], []>} : vector<24x144xf32>, vector<144x72xf32>, vector<24x72xf32> -> vector<24x72xf32>
    %54 = arith.maximumf %51, %53 : vector<24x72xf32>
    %55 = vector.shape_cast %54 : vector<24x72xf32> to vector<2x12x72xf32>
    %56 = vector.extract_strided_slice %55 {offsets = [0, 0, 0], sizes = [2, 8, 72], strides = [1, 1, 1]} : vector<2x12x72xf32> to vector<2x8x72xf32>
    %57 = vector.shape_cast %56 : vector<2x8x72xf32> to vector<16x72xf32>
    %58 = vector.extract_strided_slice %55 {offsets = [0, 1, 0], sizes = [2, 8, 72], strides = [1, 1, 1]} : vector<2x12x72xf32> to vector<2x8x72xf32>
    %59 = vector.shape_cast %58 : vector<2x8x72xf32> to vector<16x72xf32>
    %60 = vector.extract_strided_slice %55 {offsets = [0, 2, 0], sizes = [2, 8, 72], strides = [1, 1, 1]} : vector<2x12x72xf32> to vector<2x8x72xf32>
    %61 = vector.shape_cast %60 : vector<2x8x72xf32> to vector<16x72xf32>
    %62 = vector.extract_strided_slice %55 {offsets = [0, 3, 0], sizes = [2, 8, 72], strides = [1, 1, 1]} : vector<2x12x72xf32> to vector<2x8x72xf32>
    %63 = vector.shape_cast %62 : vector<2x8x72xf32> to vector<16x72xf32>
    %64 = vector.extract_strided_slice %55 {offsets = [0, 4, 0], sizes = [2, 8, 72], strides = [1, 1, 1]} : vector<2x12x72xf32> to vector<2x8x72xf32>
    %65 = vector.shape_cast %64 : vector<2x8x72xf32> to vector<16x72xf32>
    %66 = tpu.concatenate %57, %59, %61, %63, %65 in 1 : vector<16x72xf32>, vector<16x72xf32>, vector<16x72xf32>, vector<16x72xf32>, vector<16x72xf32> -> vector<16x360xf32>
    %c0_22 = arith.constant 0 : index
    %c0_23 = arith.constant 0 : index
    %67 = vector.load %arg2[%c0_22, %c0_23] : memref<1256x128xf32, #tpu.memory_space<vmem>>, vector<360x128xf32>
    %c3 = arith.constant 3 : index
    %c0_24 = arith.constant 0 : index
    %68 = vector.load %arg3[%c3, %c0_24] : memref<9x256xf32, #tpu.memory_space<vmem>>, vector<1x128xf32>
    %cst_25 = arith.constant dense<0.000000e+00> : vector<16x128xf32>
    %69 = tpu.matmul %66, %67, %cst_25 {dimension_numbers = #tpu.dot_dimension_numbers<[1], [0], [0], [1], [0, 0, 1, 1], [], []>} : vector<16x360xf32>, vector<360x128xf32>, vector<16x128xf32> -> vector<16x128xf32>
    %70 = vector.broadcast %68 : vector<1x128xf32> to vector<16x128xf32>
    %71 = arith.addf %69, %70 : vector<16x128xf32>
    %c360 = arith.constant 360 : index
    %c0_26 = arith.constant 0 : index
    %72 = vector.load %arg2[%c360, %c0_26] : memref<1256x128xf32, #tpu.memory_space<vmem>>, vector<128x128xf32>
    %cst_27 = arith.constant dense<0.000000e+00> : vector<128xf32>
    %73 = vector.multi_reduction <add>, %71, %cst_27 [0] : vector<16x128xf32> to vector<128xf32>
    %74 = vector.shape_cast %73 : vector<128xf32> to vector<1x128xf32>
    %75 = arith.mulf %71, %71 : vector<16x128xf32>
    %cst_28 = arith.constant dense<0.000000e+00> : vector<128xf32>
    %76 = vector.multi_reduction <add>, %75, %cst_28 [0] : vector<16x128xf32> to vector<128xf32>
    %77 = vector.shape_cast %76 : vector<128xf32> to vector<1x128xf32>
    %cst_29 = arith.constant dense<0.000000e+00> : vector<1x128xf32>
    %78 = tpu.matmul %74, %72, %cst_29 {dimension_numbers = #tpu.dot_dimension_numbers<[1], [0], [0], [1], [0, 0, 1, 1], [], []>} : vector<1x128xf32>, vector<128x128xf32>, vector<1x128xf32> -> vector<1x128xf32>
    %cst_30 = arith.constant dense<0.000000e+00> : vector<1x128xf32>
    %79 = tpu.matmul %77, %72, %cst_30 {dimension_numbers = #tpu.dot_dimension_numbers<[1], [0], [0], [1], [0, 0, 1, 1], [], []>} : vector<1x128xf32>, vector<128x128xf32>, vector<1x128xf32> -> vector<1x128xf32>
    %80 = arith.mulf %78, %78 : vector<1x128xf32>
    %81 = arith.subf %79, %80 : vector<1x128xf32>
    %cst_31 = arith.constant 0.000000e+00 : f32
    %82 = vector.broadcast %cst_31 : f32 to vector<1x128xf32>
    %83 = arith.maximumf %81, %82 : vector<1x128xf32>
    %c4 = arith.constant 4 : index
    %c0_32 = arith.constant 0 : index
    %84 = vector.load %arg3[%c4, %c0_32] : memref<9x256xf32, #tpu.memory_space<vmem>>, vector<1x128xf32>
    %cst_33 = arith.constant 9.99999974E-6 : f32
    %85 = vector.broadcast %cst_33 : f32 to vector<1x128xf32>
    %86 = arith.addf %83, %85 : vector<1x128xf32>
    %87 = math.rsqrt %86 : vector<1x128xf32>
    %88 = arith.mulf %84, %87 : vector<1x128xf32>
    %c5 = arith.constant 5 : index
    %c0_34 = arith.constant 0 : index
    %89 = vector.load %arg3[%c5, %c0_34] : memref<9x256xf32, #tpu.memory_space<vmem>>, vector<1x128xf32>
    %90 = arith.mulf %78, %88 : vector<1x128xf32>
    %91 = arith.subf %89, %90 : vector<1x128xf32>
    %92 = vector.broadcast %88 : vector<1x128xf32> to vector<16x128xf32>
    %93 = arith.mulf %71, %92 : vector<16x128xf32>
    %94 = vector.broadcast %91 : vector<1x128xf32> to vector<16x128xf32>
    %95 = arith.addf %93, %94 : vector<16x128xf32>
    %c0_35 = arith.constant 0 : index
    %c0_36 = arith.constant 0 : index
    %96 = vector.load %arg5[%c0_35, %c0_36] : memref<16x128xf32, #tpu.memory_space<vmem>>, vector<16x128xf32>
    tpu.vector_store %arg5[%c0_35, %c0_36], %95 {strides = array<i32>} : memref<16x128xf32, #tpu.memory_space<vmem>>, vector<16x128xf32>,
    %cst_37 = arith.constant 0.000000e+00 : f32
    %97 = vector.broadcast %cst_37 : f32 to vector<16x128xf32>
    %98 = arith.maximumf %95, %97 : vector<16x128xf32>
    %99 = vector.shape_cast %98 : vector<16x128xf32> to vector<8x2x128xf32>
    %100 = vector.extract_strided_slice %99 {offsets = [0, 0, 0], sizes = [8, 1, 128], strides = [1, 1, 1]} : vector<8x2x128xf32> to vector<8x1x128xf32>
    %101 = vector.shape_cast %100 : vector<8x1x128xf32> to vector<8x128xf32>
    %102 = vector.extract_strided_slice %99 {offsets = [0, 1, 0], sizes = [8, 1, 128], strides = [1, 1, 1]} : vector<8x2x128xf32> to vector<8x1x128xf32>
    %103 = vector.shape_cast %102 : vector<8x1x128xf32> to vector<8x128xf32>
    %104 = arith.maximumf %101, %103 : vector<8x128xf32>
    %c488 = arith.constant 488 : index
    %c0_38 = arith.constant 0 : index
    %105 = vector.load %arg2[%c488, %c0_38] : memref<1256x128xf32, #tpu.memory_space<vmem>>, vector<128x64xf32>
    %cst_39 = arith.constant dense<0.000000e+00> : vector<8x64xf32>
    %106 = tpu.matmul %104, %105, %cst_39 {dimension_numbers = #tpu.dot_dimension_numbers<[1], [0], [0], [1], [0, 0, 1, 1], [], []>} : vector<8x128xf32>, vector<128x64xf32>, vector<8x64xf32> -> vector<8x64xf32>
    %c616 = arith.constant 616 : index
    %c0_40 = arith.constant 0 : index
    %107 = vector.load %arg2[%c616, %c0_40] : memref<1256x128xf32, #tpu.memory_space<vmem>>, vector<128x64xf32>
    %cst_41 = arith.constant dense<0.000000e+00> : vector<8x64xf32>
    %108 = tpu.matmul %104, %107, %cst_41 {dimension_numbers = #tpu.dot_dimension_numbers<[1], [0], [0], [1], [0, 0, 1, 1], [], []>} : vector<8x128xf32>, vector<128x64xf32>, vector<8x64xf32> -> vector<8x64xf32>
    %109 = arith.maximumf %106, %108 : vector<8x64xf32>
    %110 = vector.shape_cast %109 : vector<8x64xf32> to vector<2x4x64xf32>
    %111 = vector.extract_strided_slice %110 {offsets = [0, 0, 0], sizes = [2, 1, 64], strides = [1, 1, 1]} : vector<2x4x64xf32> to vector<2x1x64xf32>
    %112 = vector.shape_cast %111 : vector<2x1x64xf32> to vector<2x64xf32>
    %113 = vector.extract_strided_slice %110 {offsets = [0, 1, 0], sizes = [2, 1, 64], strides = [1, 1, 1]} : vector<2x4x64xf32> to vector<2x1x64xf32>
    %114 = vector.shape_cast %113 : vector<2x1x64xf32> to vector<2x64xf32>
    %115 = vector.extract_strided_slice %110 {offsets = [0, 2, 0], sizes = [2, 1, 64], strides = [1, 1, 1]} : vector<2x4x64xf32> to vector<2x1x64xf32>
    %116 = vector.shape_cast %115 : vector<2x1x64xf32> to vector<2x64xf32>
    %117 = vector.extract_strided_slice %110 {offsets = [0, 3, 0], sizes = [2, 1, 64], strides = [1, 1, 1]} : vector<2x4x64xf32> to vector<2x1x64xf32>
    %118 = vector.shape_cast %117 : vector<2x1x64xf32> to vector<2x64xf32>
    %119 = tpu.concatenate %112, %114, %116, %118 in 1 : vector<2x64xf32>, vector<2x64xf32>, vector<2x64xf32>, vector<2x64xf32> -> vector<2x256xf32>
    %c744 = arith.constant 744 : index
    %c0_42 = arith.constant 0 : index
    %120 = vector.load %arg2[%c744, %c0_42] : memref<1256x128xf32, #tpu.memory_space<vmem>>, vector<256x128xf32>
    %cst_43 = arith.constant dense<0.000000e+00> : vector<2x128xf32>
    %121 = tpu.matmul %119, %120, %cst_43 {dimension_numbers = #tpu.dot_dimension_numbers<[1], [0], [0], [1], [0, 0, 1, 1], [], []>} : vector<2x256xf32>, vector<256x128xf32>, vector<2x128xf32> -> vector<2x128xf32>
    %c6 = arith.constant 6 : index
    %c0_44 = arith.constant 0 : index
    %122 = vector.load %arg3[%c6, %c0_44] : memref<9x256xf32, #tpu.memory_space<vmem>>, vector<1x128xf32>
    %123 = vector.broadcast %122 : vector<1x128xf32> to vector<2x128xf32>
    %124 = arith.addf %121, %123 : vector<2x128xf32>
    %cst_45 = arith.constant 0.000000e+00 : f32
    %125 = vector.broadcast %cst_45 : f32 to vector<2x128xf32>
    %126 = arith.maximumf %124, %125 : vector<2x128xf32>
    %c1000 = arith.constant 1000 : index
    %c0_46 = arith.constant 0 : index
    %127 = vector.load %arg2[%c1000, %c0_46] : memref<1256x128xf32, #tpu.memory_space<vmem>>, vector<128x128xf32>
    %cst_47 = arith.constant dense<0.000000e+00> : vector<2x128xf32>
    %128 = tpu.matmul %126, %127, %cst_47 {dimension_numbers = #tpu.dot_dimension_numbers<[1], [0], [0], [1], [0, 0, 1, 1], [], []>} : vector<2x128xf32>, vector<128x128xf32>, vector<2x128xf32> -> vector<2x128xf32>
    %c7 = arith.constant 7 : index
    %c0_48 = arith.constant 0 : index
    %129 = vector.load %arg3[%c7, %c0_48] : memref<9x256xf32, #tpu.memory_space<vmem>>, vector<1x128xf32>
    %130 = vector.broadcast %129 : vector<1x128xf32> to vector<2x128xf32>
    %131 = arith.addf %128, %130 : vector<2x128xf32>
    %cst_49 = arith.constant 0.000000e+00 : f32
    %132 = vector.broadcast %cst_49 : f32 to vector<2x128xf32>
    %133 = arith.maximumf %131, %132 : vector<2x128xf32>
    %c1128 = arith.constant 1128 : index
    %c0_50 = arith.constant 0 : index
    %134 = vector.load %arg2[%c1128, %c0_50] : memref<1256x128xf32, #tpu.memory_space<vmem>>, vector<128x128xf32>
    %cst_51 = arith.constant dense<0.000000e+00> : vector<2x128xf32>
    %135 = tpu.matmul %133, %134, %cst_51 {dimension_numbers = #tpu.dot_dimension_numbers<[1], [0], [0], [1], [0, 0, 1, 1], [], []>} : vector<2x128xf32>, vector<128x128xf32>, vector<2x128xf32> -> vector<2x128xf32>
    %c8 = arith.constant 8 : index
    %c0_52 = arith.constant 0 : index
    %136 = vector.load %arg3[%c8, %c0_52] : memref<9x256xf32, #tpu.memory_space<vmem>>, vector<1x128xf32>
    %137 = vector.broadcast %136 : vector<1x128xf32> to vector<2x128xf32>
    %138 = arith.addf %135, %137 : vector<2x128xf32>
    %cst_53 = arith.constant 0.000000e+00 : f32
    %139 = vector.broadcast %cst_53 : f32 to vector<2x128xf32>
    %140 = arith.maximumf %138, %139 : vector<2x128xf32>
    %c0_54 = arith.constant 0 : index
    %c0_55 = arith.constant 0 : index
    %141 = vector.load %arg6[%c0_54, %c0_55] : memref<2x128xf32, #tpu.memory_space<vmem>>, vector<2x128xf32>
    tpu.vector_store %arg6[%c0_54, %c0_55], %140 {strides = array<i32>} : memref<2x128xf32, #tpu.memory_space<vmem>>, vector<2x128xf32>,
    return
  }
}

</mosaic_0001>

<bundles_post_ra>
// kernel: lenet5v1_forward.1
= control target key start
LH: loop header
LB: loop body
LE: loop exit
PB: predicated region body
PF: predicated region fallthrough
CT: control target
= control target key end

     0   :  { %vm67_vm0 = vcmask 1044480   ;;  %vm37_vm1 = vcmask 1046528   ;;  %vm82_vm2 = vcmask 1043456   ;;  %vm52_vm3 = vcmask 1045504   ;;  %s3577_s9 = smov 84   ;;  %s3578_s10 = smov 28   ;;  %s5188_s0 = inlined_call_operand.vmem [shape: f32[2,28,28], index: 0, kind: input, shape index: {}]   ;;  %s5189_s1 = inlined_call_operand.vmem [shape: f32[576,144], index: 1, kind: input, shape index: {}]   ;;  %s5190_s2 = inlined_call_operand.vmem [shape: f32[1256,128], index: 2, kind: input, shape index: {}]   ;;  %s5191_s3 = inlined_call_operand.vmem [shape: f32[9,256], index: 3, kind: input, shape index: {}]   ;;  %s5192_s4 = inlined_call_operand.vmem [shape: f32[48,144], index: 4, kind: output, shape index: {0}]   ;;  %s5193_s5 = inlined_call_operand.vmem [shape: f32[16,128], index: 5, kind: output, shape index: {1}]   ;;  %s5194_s6 = inlined_call_operand.hbm [shape: f32[2,128], index: 6, kind: output, shape index: {2}]  }
   0x1   :  { %v3631_v0 = vld [vmem:[%s5188_s0] sm:$0xff]  ;;  %v3636_v1 = vld [vmem:[%s5188_s0 + $0x8] sm:$0xff]  ;;  %v3641_v2 = vld [vmem:[%s5188_s0 + $0x10] sm:$0xff]  ;;  %s3579_s11 = smov 112   ;;  %s3580_s12 = smov 56  }
   0x2   :  { %v68_v3 = vrot.slane %v3631_v0, 3  ;;  %v69_v4 = vrot.slane %v3636_v1, 3  ;;  %v71_v5 = vrot.slane %v3641_v2, 3  ;;  %v38_v6 = vrot.slane %v3631_v0, 1  ;;  %v3656_v13 = vld [vmem:[%s5188_s0 + $0x18] sm:$0xf] }
   0x3   :  { %v39_v7 = vrot.slane %v3636_v1, 1  ;;  %v41_v8 = vrot.slane %v3641_v2, 1  ;;  %v83_v9 = vrot.slane %v3631_v0, 4  ;;  %v84_v12 = vrot.slane %v3636_v1, 4  ;;  %v3661_v14 = vld [vmem:[%s5188_s0 + $0x20] sm:$0xff]  ;;  %v3666_v15 = vld [vmem:[%s5188_s0 + $0x28] sm:$0xff] }
   0x4   :  { %v70_v10 = vsel %vm67_vm0, %v68_v3, %v69_v4  ;;  %v72_v11 = vsel %vm67_vm0, %v69_v4, %v71_v5  ;;  %v53_v19 = vrot.slane %v3631_v0, 2  ;;  %v54_v21 = vrot.slane %v3636_v1, 2  ;;  %v3702_v45 = vld [vmem:[%s5188_s0 + $0x30] sm:$0xff]  ;;  %v3707_v46 = vld [vmem:[%s5188_s0 + $0x38] sm:$0xf]  ;;  %v198_v47 = vld [vmem:[%s5189_s1 + $0x8] sm:$0xff] }
   0x5   :  { %v3517_v16 = vpack.i.bf16 %v72_v11, %v70_v10  ;;  %v40_v17 = vsel %vm37_vm1, %v38_v6, %v39_v7  ;;  %v42_v18 = vsel %vm37_vm1, %v39_v7, %v41_v8  ;;  %v56_v22 = vrot.slane %v3641_v2, 2  ;;  %v200_v48 = vld [vmem:[%s5189_s1 + $0x18] sm:$0xff]  ;;  %v197_v49 = vld [vmem:[%s5189_s1] sm:$0xff]  ;;  %v199_v51 = vld [vmem:[%s5189_s1 + $0x10] sm:$0xff] }
   0x6   :  { %v3507_v20 = vpack.i.bf16 %v42_v18, %v40_v17  ;;  %v85_v23 = vsel %vm82_vm2, %v83_v9, %v84_v12  ;;  %v43_v24 = vrot.slane %v3656_v13, 1  ;;  %v45_v25 = vrot.slane %v3661_v14, 1  ;;  %v202_v52 = vld [vmem:[%s5189_s1 + $0x28] sm:$0xff]  ;;  %v204_v53 = vld [vmem:[%s5189_s1 + $0x38] sm:$0xff]  ;;  %v201_v61 = vld [vmem:[%s5189_s1 + $0x20] sm:$0xff] }
   0x7   :  { %3518 = vrot.lane.b32.xlu1 %v3517_v16, %s3577_s9  ;;  %v46_v26 = vrot.slane %v3666_v15, 1  ;;  %v55_v27 = vsel %vm52_vm3, %v53_v19, %v54_v21  ;;  %v57_v28 = vsel %vm52_vm3, %v54_v21, %v56_v22  ;;  %v73_v29 = vrot.slane %v3656_v13, 3  ;;  %v203_v62 = vld [vmem:[%s5189_s1 + $0x30] sm:$0xff]  ;;  %v206_v4 = vld [vmem:[%s5189_s1 + $0x48] sm:$0xff] }
   0x8   :  { %3508 = vrot.lane.b32.xlu0 %v3507_v20, %s3578_s10  ;;  %v75_v30 = vrot.slane %v3661_v14, 3  ;;  %v3512_v31 = vpack.i.bf16 %v57_v28, %v55_v27  ;;  %v44_v32 = vsel %vm37_vm1, %v41_v8, %v43_v24  ;;  %v86_v34 = vrot.slane %v3641_v2, 4 }
   0x9   :  { %v47_v33 = vsel %vm37_vm1, %v45_v25, %v46_v26  ;;  %v76_v35 = vrot.slane %v3666_v15, 3  ;;  %v58_v36 = vrot.slane %v3656_v13, 2  ;;  %v60_v38 = vrot.slane %v3661_v14, 2 }
   0xa   :  { %v3522_v37 = vpack.i.bf16 %v47_v33, %v44_v32  ;;  %v61_v39 = vrot.slane %v3666_v15, 2  ;;  %v74_v40 = vsel %vm67_vm0, %v71_v5, %v73_v29  ;;  %v87_v42 = vsel %vm82_vm2, %v84_v12, %v86_v34  ;;  %v208_v5 = vld [vmem:[%s5189_s1 + $0x58] sm:$0xff] }
   0xb   :  { %151 = vrot.lane.b32.xlu1 %v85_v23, %s3579_s11  ;;  %v77_v41 = vsel %vm67_vm0, %v75_v30, %v76_v35  ;;  %v59_v43 = vsel %vm52_vm3, %v56_v22, %v58_v36  ;;  %v90_v55 = vrot.slane %v3661_v14, 4  ;;  %v91_v56 = vrot.slane %v3666_v15, 4 }
   0xc   :  { %3513 = vrot.lane.b32.xlu0 %v3512_v31, %s3580_s12  ;;  %v62_v44 = vsel %vm52_vm3, %v60_v38, %v61_v39  ;;  %v3532_v50 = vpack.i.bf16 %v77_v41, %v74_v40  ;;  %v88_v57 = vrot.slane %v3656_v13, 4  ;;  %v48_v58 = vrot.slane %v3702_v45, 1 }
   0xd   :  { %v3527_v54 = vpack.i.bf16 %v62_v44, %v59_v43  ;;  %v50_v59 = vrot.slane %v3707_v46, 1  ;;  %v3095_v60 = vpack.c.bf16 %v200_v48, %v198_v47  ;;  %v3097_v63 = vpack.c.bf16 %v199_v51, %v197_v49 }
   0xe   :  { %v3099_v3 = vpack.c.bf16 %v204_v53, %v202_v52 }
   0xf   :  { %3523 = vrot.lane.b32.xlu1 %v3522_v37, %s3578_s10 }
  0x10   :  { %153 = vrot.lane.b32.xlu0 %v87_v42, %s3579_s11 }
  0x11   :  { %12 = vsyncpa [#allocation3], 0  ;;  %3096 = vmatprep.subr.bf16.mxu0 %v3095_v60  ;;  %v92_v6 = vsel %vm82_vm2, %v90_v55, %v91_v56  ;;  %v63_v7 = vrot.slane %v3702_v45, 2  ;;  %v3101_v8 = vpack.c.bf16 %v203_v62, %v201_v61  ;;  %v89_v9 = vsel %vm82_vm2, %v86_v34, %v88_v57  ;;  %v205_v13 = vld [vmem:[%s5189_s1 + $0x40] sm:$0xff]  ;;  %v207_v16 = vld [vmem:[%s5189_s1 + $0x50] sm:$0xff]  ;;  %s3585_s28 = smov 16  }
  0x12   :  { %3098 = vmatpush1.bf16.msra.mxu0 %v3097_v63  ;;  %v49_v10 = vsel %vm37_vm1, %v46_v26, %v48_v58  ;;  %v51_v11 = vsel %vm37_vm1, %v48_v58, %v50_v59  ;;  %v3103_v12 = vpack.c.bf16 %v208_v5, %v206_v4  ;;  %v210_v17 = vld [vmem:[%s5189_s1 + $0x68] sm:$0xff]  ;;  %v212_v18 = vld [vmem:[%s5189_s1 + $0x78] sm:$0xff]  ;;  %v93_v21 = vrot.slane %v3702_v45, 4  ;;  %v209_v25 = vld [vmem:[%s5189_s1 + $0x60] sm:$0xff]  ;;  %s3586_s29 = smov 72   ;;  %s3587_s30 = smov 88  }
  0x13   :  { %3533 = vrot.lane.b32.xlu1 %v3532_v50, %s3577_s9  ;;  %3100 = vmatprep.subr.bf16.mxu0 %v3099_v3  ;;  %v3537_v19 = vpack.i.bf16 %v51_v11, %v49_v10  ;;  %v64_v20 = vsel %vm52_vm3, %v61_v39, %v63_v7  ;;  %v3105_v22 = vpack.c.bf16 %v207_v16, %v205_v13  ;;  %v78_v23 = vrot.slane %v3702_v45, 3  ;;  %v211_v26 = vld [vmem:[%s5189_s1 + $0x70] sm:$0xff]  ;;  %v214_v27 = vld [vmem:[%s5189_s1 + $0x88] sm:$0xff]  ;;  %v216_v28 = vld [vmem:[%s5189_s1 + $0x98] sm:$0xff]  ;;  %s3591_s22 = smov 64   ;;  %s3592_s21 = smov [#allocation2]  }
  0x14   :  { %3528 = vrot.lane.b32.xlu0 %v3527_v54, %s3580_s12  ;;  %v3107_v24 = vpack.c.bf16 %v212_v18, %v210_v17  ;;  %v94_v29 = vsel %vm82_vm2, %v91_v56, %v93_v21  ;;  %v80_v30 = vrot.slane %v3707_v46, 3  ;;  %v3109_v31 = vpack.c.bf16 %v211_v26, %v209_v25  ;;  %v213_v36 = vld [vmem:[%s5189_s1 + $0x80] sm:$0xff]  ;;  %v215_v37 = vld [vmem:[%s5189_s1 + $0x90] sm:$0xff]  ;;  %v218_v38 = vld [vmem:[%s5189_s1 + $0xa8] sm:$0xff] }
  0x15   :  { %v79_v32 = vsel %vm67_vm0, %v76_v35, %v78_v23  ;;  %v65_v33 = vrot.slane %v3707_v46, 2  ;;  %v3111_v34 = vpack.c.bf16 %v216_v28, %v214_v27  ;;  %v220_v35 = vld [vmem:[%s5189_s1 + $0xb8] sm:$0xff]  ;;  %v3113_v40 = vpack.c.bf16 %v215_v37, %v213_v36  ;;  %v217_v44 = vld [vmem:[%s5189_s1 + $0xa0] sm:$0xff]  ;;  %v219_v47 = vld [vmem:[%s5189_s1 + $0xb0] sm:$0xff] }
  0x16   :  { %3102 = vmatpush1.bf16.msra.mxu0 %v3101_v8  ;;  %v81_v39 = vsel %vm67_vm0, %v78_v23, %v80_v30  ;;  %v95_v42 = vrot.slane %v3707_v46, 4  ;;  %v3115_v43 = vpack.c.bf16 %v220_v35, %v218_v38  ;;  %v222_v48 = vld [vmem:[%s5189_s1 + $0xc8] sm:$0xff]  ;;  %v224_v49 = vld [vmem:[%s5189_s1 + $0xd8] sm:$0xff]  ;;  %v3117_v46 = vpack.c.bf16 %v219_v47, %v217_v44  ;;  %v221_v52 = vld [vmem:[%s5189_s1 + $0xc0] sm:$0xff] }
  0x17   :  { %157 = vrot.lane.b32.xlu1 %v92_v6, %s3579_s11  ;;  %3104 = vmatprep.subr.bf16.mxu0 %v3103_v12  ;;  %v66_v41 = vsel %vm52_vm3, %v63_v7, %v65_v33  ;;  %v3119_v51 = vpack.c.bf16 %v224_v49, %v222_v48  ;;  %v223_v53 = vld [vmem:[%s5189_s1 + $0xd0] sm:$0xff]  ;;  %v226_v54 = vld [vmem:[%s5189_s1 + $0xe8] sm:$0xff]  ;;  %v228_v55 = vld [vmem:[%s5189_s1 + $0xf8] sm:$0xff]  ;;  %vm3581_vm4 = vmmov 1   ;;  %vm245_vm6 = vcmask 97280  }
  0x18   :  { %155 = vrot.lane.b32.xlu0 %v89_v9, %s3579_s11  ;;  %v96_v50 = vsel %vm82_vm2, %v93_v21, %v95_v42  ;;  %v3121_v56 = vpack.c.bf16 %v223_v53, %v221_v52  ;;  %v3123_v57 = vpack.c.bf16 %v228_v55, %v226_v54  ;;  %v225_v58 = vld [vmem:[%s5189_s1 + $0xe0] sm:$0xff]  ;;  %v227_v59 = vld [vmem:[%s5189_s1 + $0xf0] sm:$0xff]  ;;  %v230_v60 = vld [vmem:[%s5189_s1 + $0x108] sm:$0xff]  ;;  %vm169_vm7 = vcmask 228352  }
  0x19   :  { %v232_v61 = vld [vmem:[%s5189_s1 + $0x118] sm:$0xf]  ;;  %v3125_v62 = vpack.c.bf16 %v227_v59, %v225_v58  ;;  %v229_v3 = vld [vmem:[%s5189_s1 + $0x100] sm:$0xff]  ;;  %v231_v4 = vld [vmem:[%s5189_s1 + $0x110] sm:$0xf]  ;;  %vm176_vm8 = vcmask 457728  }
  0x1a   :  { %3106 = vmatpush1.bf16.msra.mxu0 %v3105_v22  ;;  %v3127_v63 = vpack.c.bf16 %v232_v61, %v230_v60  ;;  %vm3128_vm5 = vmpackc.low %vm82_vm2, %vm3581_vm4  ;;  %v3130_v5 = vpack.c.bf16 %v231_v4, %v229_v3  ;;  %vm183_vm9 = vcmask 687104   ;;  %vm190_vm10 = vcmask 916480   ;;  %v379_v59 = vld [vmem:[%s5189_s1 + $0x128] sm:$0xff]  ;;  %v381_v60 = vld [vmem:[%s5189_s1 + $0x138] sm:$0xff] }
  0x1b   :  { %123 = vrot.lane.b32.xlu1 %v64_v20, %s3580_s12  ;;  %3108 = vmatprep.subr.bf16.mxu0 %v3107_v24  ;;  %v378_v61 = vld [vmem:[%s5189_s1 + $0x120] sm:$0xff]  ;;  %v383_v3 = vld [vmem:[%s5189_s1 + $0x148] sm:$0xff]  ;;  %v385_v4 = vld [vmem:[%s5189_s1 + $0x158] sm:$0xff]  ;;  %vm366_vm11 = vcmask 130048   ;;  %vm1216_vm12 = vcmask 1041409   ;;  %vm1218_vm13 = vcmask 1042434  }
  0x1c   :  { %3538 = vrot.lane.b32.xlu0 %v3537_v19, %s3578_s10  ;;  %vm1220_vm14 = vcmask 1043459   ;;  %vm1222_vm15 = vcmask 1044484   ;;  %vm1224_vm0 = vcmask 1045509   ;;  %vm1226_vm1 = vcmask 1046534  }
  0x1d   :  { %vm1228_vm2 = vcmask 1047559   ;;  %vm1478_vm3 = vcmask 1041408   ;;  %vm1479_vm4 = vcmask 1045508  }
  0x1e   :  { %3110 = vmatpush1.bf16.msra.mxu0 %v3109_v31 }
  0x1f   :  { %159 = vrot.lane.b32.xlu1 %v94_v29, %s3579_s11  ;;  %3112 = vmatprep.subr.bf16.mxu0 %v3111_v34 }
  0x20   :  { %141 = vrot.lane.b32.xlu0 %v79_v32, %s3577_s9 }
  0x22   :  { %3114 = vmatpush1.bf16.msra.mxu0 %v3113_v40 }
  0x23   :  { %143 = vrot.lane.b32.xlu1 %v81_v39, %s3577_s9  ;;  %3116 = vmatprep.subr.bf16.mxu0 %v3115_v43  ;;  %s3588_s9 = smov 32  }
  0x24   :  { %125 = vrot.lane.b32.xlu0 %v66_v41, %s3580_s12 }
  0x26   :  { %3118 = vmatpush1.bf16.msra.mxu0 %v3117_v46 }
  0x27   :  { %3120 = vmatprep.subr.bf16.mxu0 %v3119_v51 }
  0x28   :  { %161 = vrot.lane.b32.xlu0 %v96_v50, %s3579_s11 }
  0x2a   :  { %3122 = vmatpush1.bf16.msra.mxu0 %v3121_v56 }
  0x2b   :  { %3124 = vmatprep.subr.bf16.mxu0 %v3123_v57 }
  0x2e   :  { %3126 = vmatpush1.bf16.msra.mxu0 %v3125_v62  ;;  %v380_v62 = vld [vmem:[%s5189_s1 + $0x130] sm:$0xff] }
  0x2f   :  { %3129 = vmatprep.subr.msk.bf16.mxu0 %vm3128_vm5, %v3127_v63  ;;  %v3135_v63 = vpack.c.bf16 %v380_v62, %v378_v61 }
  0x32   :  { %3132 = vmatpush1.bf16.msk.msra.mxu0 %vm3128_vm5, %v3130_v5  ;;  %v3137_v5 = vpack.c.bf16 %v385_v4, %v383_v3  ;;  %vm1461_vm5 = vcmask 1042432  }
  0x79   :  { %v3519_v6 = vpop.permute.xlu1 %3518 }
  0x7a   :  { %v3509_v7 = vpop.permute.xlu0 %3508  ;;  %v3520_v16 = vunpack.i.l.bf16 %v3519_v6  ;;  %v3521_v22 = vunpack.i.h.bf16 %v3519_v6  ;;  %v382_v6 = vld [vmem:[%s5189_s1 + $0x140] sm:$0xff] }
  0x7b   :  { %v3511_v8 = vunpack.i.h.bf16 %v3509_v7  ;;  %v3510_v9 = vunpack.i.l.bf16 %v3509_v7  ;;  %v384_v7 = vld [vmem:[%s5189_s1 + $0x150] sm:$0xff] }
  0x7d   :  { %v152_v10 = vpop.permute.xlu1 %151  ;;  %v171_v17 = vsel %vm169_vm7, %v3636_v1, %v3511_v8  ;;  %v170_v18 = vsel %vm169_vm7, %v3631_v0, %v3510_v9  ;;  %v3139_v8 = vpack.c.bf16 %v384_v7, %v382_v6  ;;  %v387_v9 = vld [vmem:[%s5189_s1 + $0x168] sm:$0xff] }
  0x7e   :  { %v3514_v11 = vpop.permute.xlu0 %3513  ;;  %2610 = vmatprep.mubr.msk.f32.mxu0 %vm245_vm6, %v152_v10 }
  0x7f   :  { %v3516_v12 = vunpack.i.h.bf16 %v3514_v11  ;;  %v3515_v13 = vunpack.i.l.bf16 %v3514_v11 }
  0x81   :  { %v3524_v19 = vpop.permute.xlu1 %3523  ;;  %v177_v20 = vsel %vm176_vm8, %v170_v18, %v3515_v13  ;;  %v178_v21 = vsel %vm176_vm8, %v171_v17, %v3516_v12  ;;  %v386_v12 = vld [vmem:[%s5189_s1 + $0x160] sm:$0xff]  ;;  %v388_v13 = vld [vmem:[%s5189_s1 + $0x170] sm:$0xff]  ;;  %v391_v17 = vld [vmem:[%s5189_s1 + $0x188] sm:$0xff] }
  0x82   :  { %v3526_v23 = vunpack.i.h.bf16 %v3524_v19  ;;  %v3525_v24 = vunpack.i.l.bf16 %v3524_v19  ;;  %v154_v25 = vpop.permute.xlu0 %153  ;;  %v184_v26 = vsel %vm183_vm9, %v177_v20, %v3520_v16  ;;  %v185_v1 = vsel %vm183_vm9, %v178_v21, %v3521_v22  ;;  %v393_v18 = vld [vmem:[%s5189_s1 + $0x198] sm:$0xff]  ;;  %v390_v20 = vld [vmem:[%s5189_s1 + $0x180] sm:$0xff]  ;;  %v392_v21 = vld [vmem:[%s5189_s1 + $0x190] sm:$0xff] }
  0x83   :  { %v191_v27 = vsel %vm190_vm10, %v184_v26, %v152_v10  ;;  %v192_v34 = vsel %vm190_vm10, %v185_v1, %v154_v25  ;;  %v389_v10 = vld [vmem:[%s5189_s1 + $0x178] sm:$0xff]  ;;  %v3143_v16 = vpack.c.bf16 %v388_v13, %v386_v12  ;;  %v3145_v19 = vpack.c.bf16 %v393_v18, %v391_v17  ;;  %v394_v26 = vld [vmem:[%s5189_s1 + $0x1a0] sm:$0xff] }
  0x84   :  { %329 = vmatmul.mubr.f32.vlgmr.msra.gmra.mrb[0].mxu0 %v191_v27  ;;  %v173_v28 = vsel %vm169_vm7, %v3661_v14, %v3526_v23  ;;  %v172_v29 = vsel %vm169_vm7, %v3641_v2, %v3525_v24  ;;  %v3141_v11 = vpack.c.bf16 %v389_v10, %v387_v9  ;;  %v3147_v22 = vpack.c.bf16 %v392_v21, %v390_v20  ;;  %v395_v23 = vld [vmem:[%s5189_s1 + $0x1a8] sm:$0xff]  ;;  %v397_v24 = vld [vmem:[%s5189_s1 + $0x1b8] sm:$0xff]  ;;  %v396_v27 = vld [vmem:[%s5189_s1 + $0x1b0] sm:$0xff] }
  0x85   :  { %2611 = vmatprep.mubr.msk.f32.mxu0 %vm245_vm6, %v154_v25  ;;  %v3534_v0 = vpop.permute.xlu1 %3533  ;;  %v3149_v25 = vpack.c.bf16 %v397_v24, %v395_v23  ;;  %v3151_v1 = vpack.c.bf16 %v396_v27, %v394_v26 }
  0x86   :  { %v3535_v30 = vunpack.i.l.bf16 %v3534_v0  ;;  %v3529_v31 = vpop.permute.xlu0 %3528  ;;  %v3536_v36 = vunpack.i.h.bf16 %v3534_v0  ;;  %v399_v0 = vld [vmem:[%s5189_s1 + $0x1c8] sm:$0xff] }
  0x87   :  { %v3531_v32 = vunpack.i.h.bf16 %v3529_v31  ;;  %v3530_v33 = vunpack.i.l.bf16 %v3529_v31  ;;  %v400_v31 = vld [vmem:[%s5189_s1 + $0x1d0] sm:$0xff] }
  0x88   :  { %335 = vmatmul.mubr.f32.gmra.mrb[2].mxu0 %v192_v34  ;;  %v405_v34 = vld [vmem:[%s5189_s1 + $0x1f8] sm:$0xff] }
  0x89   :  { %v158_v37 = vpop.permute.xlu1 %157  ;;  %v179_v38 = vsel %vm176_vm8, %v172_v29, %v3530_v33  ;;  %v180_v35 = vsel %vm176_vm8, %v173_v28, %v3531_v32  ;;  %v401_v28 = vld [vmem:[%s5189_s1 + $0x1d8] sm:$0xff]  ;;  %v403_v33 = vld [vmem:[%s5189_s1 + $0x1e8] sm:$0xff] }
  0x8a   :  { %v156_v39 = vpop.permute.xlu0 %155  ;;  %v186_v40 = vsel %vm183_vm9, %v179_v38, %v3535_v30  ;;  %v187_v14 = vsel %vm183_vm9, %v180_v35, %v3536_v36  ;;  %v3153_v29 = vpack.c.bf16 %v401_v28, %v399_v0  ;;  %v398_v30 = vld [vmem:[%s5189_s1 + $0x1c0] sm:$0xff]  ;;  %v3157_v36 = vpack.c.bf16 %v405_v34, %v403_v33  ;;  %v404_v38 = vld [vmem:[%s5189_s1 + $0x1f0] sm:$0xff] }
  0x8b   :  { %2612 = vmatprep.mubr.msk.f32.mxu0 %vm245_vm6, %v156_v39  ;;  %v193_v2 = vsel %vm190_vm10, %v186_v40, %v156_v39  ;;  %v194_v44 = vsel %vm190_vm10, %v187_v14, %v158_v37  ;;  %v3155_v32 = vpack.c.bf16 %v400_v31, %v398_v30  ;;  %v407_v39 = vld [vmem:[%s5189_s1 + $0x208] sm:$0xff]  ;;  %v409_v40 = vld [vmem:[%s5189_s1 + $0x218] sm:$0xff]  ;;  %v406_v14 = vld [vmem:[%s5189_s1 + $0x200] sm:$0xff] }
  0x8c   :  { %341 = vmatmul.mubr.f32.gmra.mrb[4].mxu0 %v193_v2  ;;  %v3161_v2 = vpack.c.bf16 %v409_v40, %v407_v39 }
  0x8d   :  { %2613 = vmatprep.mubr.msk.f32.mxu0 %vm245_vm6, %v158_v37  ;;  %v124_v41 = vpop.permute.xlu1 %123  ;;  %v402_v37 = vld [vmem:[%s5189_s1 + $0x1e0] sm:$0xff] }
  0x8e   :  { %v3539_v42 = vpop.permute.xlu0 %3538  ;;  %v3159_v35 = vpack.c.bf16 %v404_v38, %v402_v37 }
  0x8f   :  { %v3540_v43 = vunpack.i.l.bf16 %v3539_v42  ;;  %v3541_v49 = vunpack.i.h.bf16 %v3539_v42 }
  0x90   :  { %347 = vmatmul.mubr.f32.gmra.mrb[6].mxu0 %v194_v44  ;;  %v413_v44 = vld [vmem:[%s5189_s1 + $0x238] sm:$0xff] }
  0x91   :  { %v174_v47 = vsel %vm169_vm7, %v3666_v15, %v3540_v43  ;;  %v160_v48 = vpop.permute.xlu1 %159  ;;  %v175_v54 = vsel %vm169_vm7, %v3702_v45, %v3541_v49  ;;  %v3133_v45 = vpack.c.bf16 %v381_v60, %v379_v59  ;;  %v411_v43 = vld [vmem:[%s5189_s1 + $0x228] sm:$0xff]  ;;  %v412_v49 = vld [vmem:[%s5189_s1 + $0x230] sm:$0xff]  ;;  %vm1495_vm7 = vcmask 1040384  }
  0x92   :  { %v181_v46 = vsel %vm176_vm8, %v174_v47, %v124_v41  ;;  %v142_v50 = vpop.permute.xlu0 %141  ;;  %2614 = vmatprep.mubr.msk.f32.mxu0 %vm245_vm6, %v160_v48  ;;  %v408_v41 = vld [vmem:[%s5189_s1 + $0x210] sm:$0xff]  ;;  %v410_v47 = vld [vmem:[%s5189_s1 + $0x220] sm:$0xff] }
  0x93   :  { %v188_v51 = vsel %vm183_vm9, %v181_v46, %v142_v50  ;;  %3134 = vmatprep.subr.bf16.mxu1 %v3133_v45  ;;  %3170 = vmatprep.subr.bf16.mxu0 %v3133_v45  ;;  %v3163_v42 = vpack.c.bf16 %v408_v41, %v406_v14  ;;  %v3167_v46 = vpack.c.bf16 %v412_v49, %v410_v47  ;;  %v235_v50 = vlaneseq }
  0x94   :  { %v195_v52 = vsel %vm190_vm10, %v188_v51, %v160_v48  ;;  %3136 = vmatpush1.bf16.msra.mxu1 %v3135_v63  ;;  %3172 = vmatpush1.bf16.msra.mxu0 %v3135_v63  ;;  %v3165_v48 = vpack.c.bf16 %v413_v44, %v411_v43 }
  0x95   :  { %353 = vmatmul.mubr.f32.gmra.mrb[8].mxu0 %v195_v52  ;;  %v144_v56 = vpop.permute.xlu1 %143  ;;  %3138 = vmatprep.subr.bf16.mxu1 %v3137_v5  ;;  %v3998_v51 = vshrl.u32 %v235_v50, 7 }
  0x96   :  { %v126_v53 = vpop.permute.xlu0 %125  ;;  %3174 = vmatprep.subr.bf16.mxu0 %v3137_v5 }
  0x97   :  { %v182_v55 = vsel %vm176_vm8, %v175_v54, %v126_v53  ;;  %v4001_v52 = vsub.s32 0, %v3998_v51  ;;  %v233_v53 = vld [vmem:[%s5191_s3] ss:$8 sm:$0x3]  ;;  %v4007_v54 = vsub.s32 1, %v3998_v51  ;;  %vm4585_vm8 = vmor %vm1478_vm3, %vm1479_vm4  ;;  %vm1552_vm3 = vcmask 719872  }
  0x98   :  { %v189_v15 = vsel %vm183_vm9, %v182_v55, %v144_v56  ;;  %3140 = vmatpush1.bf16.msra.mxu1 %v3139_v8  ;;  %3176 = vmatpush1.bf16.msra.mxu0 %v3139_v8  ;;  %vm1547_vm4 = vcmask 588800  }
  0x99   :  { %3142 = vmatprep.subr.bf16.mxu1 %v3141_v11  ;;  %3178 = vmatprep.subr.bf16.mxu0 %v3141_v11  ;;  %v4010_v55 = vrot.slane %v233_v53, %v4001_v52  ;;  %v4013_v56 = vrot.slane %v233_v53, %v4007_v54 }
  0x9a   :  { %v162_v57 = vpop.permute.xlu0 %161 }
  0x9b   :  { %2615 = vmatprep.mubr.msk.f32.mxu0 %vm245_vm6, %v162_v57  ;;  %v196_v58 = vsel %vm190_vm10, %v189_v15, %v162_v57  ;;  %vm1462_vm6 = vcmask 1046532   ;;  %vm4607_vm10 = vmor %vm1495_vm7, %vm1222_vm15 }
  0x9c   :  { %359 = vmatmul.mubr.f32.gmra.mrb[10].mxu0 %v196_v58  ;;  %3144 = vmatpush1.bf16.msra.mxu1 %v3143_v16  ;;  %vm4597_vm9 = vmor %vm1461_vm5, %vm1462_vm6  ;;  %vm1555_vm5 = vcmask 261120   ;;  %vm1604_vm6 = vcmask 850944  }
  0x9d   :  { %3180 = vmatpush1.bf16.msra.mxu0 %v3143_v16  ;;  %3146 = vmatprep.subr.bf16.mxu1 %v3145_v19 }
  0x9e   :  { %3182 = vmatprep.subr.bf16.mxu0 %v3145_v19 }
  0xa0   :  { %3148 = vmatpush1.bf16.msra.mxu1 %v3147_v22 }
  0xa1   :  { %3184 = vmatpush1.bf16.msra.mxu0 %v3147_v22  ;;  %3150 = vmatprep.subr.bf16.mxu1 %v3149_v25 }
  0xa2   :  { %3186 = vmatprep.subr.bf16.mxu0 %v3149_v25 }
  0xa4   :  { %3152 = vmatpush1.bf16.msra.mxu1 %v3151_v1 }
  0xa5   :  { %3188 = vmatpush1.bf16.msra.mxu0 %v3151_v1  ;;  %3154 = vmatprep.subr.bf16.mxu1 %v3153_v29 }
  0xa6   :  { %3190 = vmatprep.subr.bf16.mxu0 %v3153_v29 }
  0xa8   :  { %3156 = vmatpush1.bf16.msra.mxu1 %v3155_v32 }
  0xa9   :  { %3192 = vmatpush1.bf16.msra.mxu0 %v3155_v32  ;;  %3158 = vmatprep.subr.bf16.mxu1 %v3157_v36 }
  0xaa   :  { %3194 = vmatprep.subr.bf16.mxu0 %v3157_v36 }
  0xac   :  { %3160 = vmatpush1.bf16.msra.mxu1 %v3159_v35 }
  0xad   :  { %3196 = vmatpush1.bf16.msra.mxu0 %v3159_v35  ;;  %3162 = vmatprep.subr.bf16.mxu1 %v3161_v2 }
  0xae   :  { %3198 = vmatprep.subr.bf16.mxu0 %v3161_v2 }
  0xb0   :  { %3164 = vmatpush1.bf16.msra.mxu1 %v3163_v42 }
  0xb1   :  { %3200 = vmatpush1.bf16.msra.mxu0 %v3163_v42  ;;  %3166 = vmatprep.subr.bf16.mxu1 %v3165_v48 }
  0xb2   :  { %3202 = vmatprep.subr.bf16.mxu0 %v3165_v48 }
  0xb4   :  { %3168 = vmatpush1.bf16.msra.mxu1 %v3167_v46 }
  0xb5   :  { %3204 = vmatpush1.bf16.msra.mxu0 %v3167_v46 }
 0x157   :  { %v330_v15 = vpop.f32.mrb[0].mxu0 }
 0x158   :  { %v4016_v57 = vadd.f32 %v330_v15, %v4010_v55  ;;  %v332_v58 = vpop.f32.mrb[1].mxu0 }
 0x159   :  { %v4019_v59 = vadd.f32 %v332_v58, %v4013_v56 }
 0x15a   :  { %365 = vst [vmem:[%s5192_s4] sm:$0xff] %v4016_v57  ;;  %v442_v17 = vmul.f32 %v4016_v57, %v4016_v57 }
 0x15b   :  { %367 = vst.msk [vmem:[%s5192_s4 + $0x8] sm:$0xff] %vm366_vm11, %v4019_v59  ;;  %v336_v60 = vpop.f32.mrb[2].mxu0  ;;  %v443_v11 = vmul.f32 %v4019_v59, %v4019_v59  ;;  %v425_v26 = vsel %vm366_vm11, %v4019_v59, 0.0 }
 0x15c   :  { %v4031_v45 = vadd.f32 %v336_v60, %v4010_v55  ;;  %v338_v61 = vpop.f32.mrb[3].mxu0 }
 0x15d   :  { %v4034_v62 = vadd.f32 %v338_v61, %v4013_v56  ;;  %v465_v27 = vsel %vm366_vm11, %v443_v11, 0.0 }
 0x15e   :  { %368 = vst [vmem:[%s5192_s4 + $0x10] sm:$0xff] %v4031_v45  ;;  %v444_v12 = vmul.f32 %v4031_v45, %v4031_v45  ;;  %v414_v22 = vadd.f32 %v4031_v45, %v4016_v57 }
 0x15f   :  { %369 = vst.msk [vmem:[%s5192_s4 + $0x18] sm:$0xff] %vm366_vm11, %v4034_v62  ;;  %v342_v63 = vpop.f32.mrb[4].mxu0  ;;  %v445_v10 = vmul.f32 %v4034_v62, %v4034_v62  ;;  %v426_v18 = vsel %vm366_vm11, %v4034_v62, 0.0 }
 0x160   :  { %v4046_v3 = vadd.f32 %v342_v63, %v4010_v55  ;;  %v344_v4 = vpop.f32.mrb[5].mxu0  ;;  %v454_v1 = vadd.f32 %v444_v12, %v442_v17  ;;  %v427_v28 = vadd.f32 %v426_v18, %v425_v26 }
 0x161   :  { %v4049_v5 = vadd.f32 %v344_v4, %v4013_v56  ;;  %v466_v23 = vsel %vm366_vm11, %v445_v10, 0.0 }
 0x162   :  { %370 = vst [vmem:[%s5192_s4 + $0x20] sm:$0xff] %v4046_v3  ;;  %v446_v19 = vmul.f32 %v4046_v3, %v4046_v3  ;;  %v415_v29 = vadd.f32 %v414_v22, %v4046_v3  ;;  %v467_v32 = vadd.f32 %v466_v23, %v465_v27 }
 0x163   :  { %371 = vst.msk [vmem:[%s5192_s4 + $0x28] sm:$0xff] %vm366_vm11, %v4049_v5  ;;  %v348_v6 = vpop.f32.mrb[6].mxu0  ;;  %v447_v13 = vmul.f32 %v4049_v5, %v4049_v5  ;;  %v428_v0 = vsel %vm366_vm11, %v4049_v5, 0.0 }
 0x164   :  { %v4061_v7 = vadd.f32 %v348_v6, %v4010_v55  ;;  %v350_v8 = vpop.f32.mrb[7].mxu0  ;;  %v455_v33 = vadd.f32 %v454_v1, %v446_v19  ;;  %v429_v37 = vadd.f32 %v428_v0, %v427_v28 }
 0x165   :  { %v4064_v9 = vadd.f32 %v350_v8, %v4013_v56  ;;  %v468_v30 = vsel %vm366_vm11, %v447_v13, 0.0 }
 0x166   :  { %372 = vst [vmem:[%s5192_s4 + $0x30] sm:$0xff] %v4061_v7  ;;  %v448_v31 = vmul.f32 %v4061_v7, %v4061_v7  ;;  %v416_v38 = vadd.f32 %v415_v29, %v4061_v7  ;;  %v469_v40 = vadd.f32 %v468_v30, %v467_v32 }
 0x167   :  { %373 = vst.msk [vmem:[%s5192_s4 + $0x38] sm:$0xff] %vm366_vm11, %v4064_v9  ;;  %v449_v24 = vmul.f32 %v4064_v9, %v4064_v9  ;;  %v430_v34 = vsel %vm366_vm11, %v4064_v9, 0.0 }
 0x168   :  { %v354_v16 = vpop.f32.mrb[8].mxu0  ;;  %v456_v41 = vadd.f32 %v455_v33, %v448_v31  ;;  %v431_v42 = vadd.f32 %v430_v34, %v429_v37  ;;  %v983_v37 = vld [vmem:[%s5189_s1 + $0x250] sm:$0xff] }
 0x169   :  { %v4090_v20 = vadd.f32 %v354_v16, %v4010_v55  ;;  %v356_v21 = vpop.f32.mrb[9].mxu0  ;;  %v470_v35 = vsel %vm366_vm11, %v449_v24, 0.0 }
 0x16a   :  { %v4098_v25 = vadd.f32 %v356_v21, %v4013_v56  ;;  %v471_v48 = vadd.f32 %v470_v35, %v469_v40  ;;  %v3582_v40 = vmov 0.0|0.0  }
 0x16b   :  { %374 = vst [vmem:[%s5192_s4 + $0x40] sm:$0xff] %v4090_v20  ;;  %v450_v39 = vmul.f32 %v4090_v20, %v4090_v20  ;;  %v417_v43 = vadd.f32 %v416_v38, %v4090_v20  ;;  %v1354_v38 = vld [vmem:[%s5189_s1 + $0x360] sm:$0xff]  ;;  %3205 = vmatprep.subr.bf16.mxu1 %v3582_v40  ;;  %3232 = vmatprep.subr.bf16.mxu0 %v3582_v40 }
 0x16c   :  { %375 = vst.msk [vmem:[%s5192_s4 + $0x48] sm:$0xff] %vm366_vm11, %v4098_v25  ;;  %v451_v36 = vmul.f32 %v4098_v25, %v4098_v25  ;;  %v432_v2 = vsel %vm366_vm11, %v4098_v25, 0.0 }
 0x16d   :  { %v457_v50 = vadd.f32 %v456_v41, %v450_v39  ;;  %v1355_v39 = vld [vmem:[%s5189_s1 + $0x370] sm:$0xff] }
 0x16e   :  { %v472_v49 = vsel %vm366_vm11, %v451_v36, 0.0  ;;  %v982_v36 = vld [vmem:[%s5189_s1 + $0x240] sm:$0xff]  ;;  %v985_v41 = vld [vmem:[%s5189_s1 + $0x270] sm:$0xff] }
 0x16f   :  { %v360_v14 = vpop.f32.mrb[10].mxu0  ;;  %v473_v60 = vadd.f32 %v472_v49, %v471_v48  ;;  %v3206_v35 = vpack.c.bf16 %v983_v37, %v982_v36  ;;  %v986_v49 = vld [vmem:[%s5189_s1 + $0x280] sm:$0xff]  ;;  %v999_v37 = vld [vmem:[%s5189_s1 + $0x350] sm:$0xff] }
 0x170   :  { %v4130_v44 = vadd.f32 %v360_v14, %v4010_v55  ;;  %v362_v47 = vpop.f32.mrb[11].mxu0  ;;  %v433_v55 = vadd.f32 %v432_v2, %v431_v42  ;;  %v3233_v2 = vpack.c.bf16 %v1355_v39, %v1354_v38  ;;  %v984_v14 = vld [vmem:[%s5189_s1 + $0x260] sm:$0xff] }
 0x171   :  { %v4134_v46 = vadd.f32 %v362_v47, %v4013_v56  ;;  %v1356_v42 = vld [vmem:[%s5189_s1 + $0x380] sm:$0xff]  ;;  %v1357_v47 = vld [vmem:[%s5189_s1 + $0x390] sm:$0xff] }
 0x172   :  { %376 = vst [vmem:[%s5192_s4 + $0x50] sm:$0xff] %v4130_v44  ;;  %v418_v53 = vadd.f32 %v417_v43, %v4130_v44  ;;  %v452_v15 = vmul.f32 %v4130_v44, %v4130_v44  ;;  %v3209_v43 = vpack.c.bf16 %v985_v41, %v984_v14  ;;  %v3236_v48 = vpack.c.bf16 %v1357_v47, %v1356_v42  ;;  %v998_v36 = vld [vmem:[%s5189_s1 + $0x340] sm:$0xff] }
 0x173   :  { %377 = vst.msk [vmem:[%s5192_s4 + $0x58] sm:$0xff] %vm366_vm11, %v4134_v46  ;;  %v453_v56 = vmul.f32 %v4134_v46, %v4134_v46  ;;  %v434_v58 = vsel %vm366_vm11, %v4134_v46, 0.0  ;;  %v1370_v38 = vld [vmem:[%s5189_s1 + $0x460] sm:$0xff]  ;;  %v3230_v39 = vpack.c.bf16 %v999_v37, %v998_v36 }
 0x174   :  { %v458_v61 = vadd.f32 %v457_v50, %v452_v15  ;;  %v435_v63 = vadd.f32 %v434_v58, %v433_v55  ;;  %v419_v4 = vrot.slane %v418_v53, 4  ;;  %v987_v50 = vld [vmem:[%s5189_s1 + $0x290] sm:$0xff]  ;;  %v988_v58 = vld [vmem:[%s5189_s1 + $0x2a0] sm:$0xff] }
 0x175   :  { %v474_v6 = vsel %vm366_vm11, %v453_v56, 0.0  ;;  %v3212_v15 = vpack.c.bf16 %v987_v50, %v986_v49  ;;  %v1359_v55 = vld [vmem:[%s5189_s1 + $0x3b0] sm:$0xff] }
 0x176   :  { %v459_v8 = vrot.slane %v458_v61, 4  ;;  %v475_v10 = vadd.f32 %v474_v6, %v473_v60  ;;  %v436_v11 = vrot.slane %v435_v63, 4  ;;  %v420_v12 = vadd.f32 %v419_v4, %v418_v53  ;;  %v1358_v53 = vld [vmem:[%s5189_s1 + $0x3a0] sm:$0xff]  ;;  %v989_v60 = vld [vmem:[%s5189_s1 + $0x2b0] sm:$0xff] }
 0x177   :  { %v3239_v56 = vpack.c.bf16 %v1359_v55, %v1358_v53  ;;  %v1361_v4 = vld [vmem:[%s5189_s1 + $0x3d0] sm:$0xff]  ;;  %v990_v6 = vld [vmem:[%s5189_s1 + $0x2c0] sm:$0xff] }
 0x178   :  { %v460_v13 = vadd.f32 %v459_v8, %v458_v61  ;;  %v437_v16 = vadd.f32 %v436_v11, %v435_v63  ;;  %v421_v17 = vrot.slane %v420_v12, 2  ;;  %v476_v18 = vrot.slane %v475_v10, 4  ;;  %v1360_v61 = vld [vmem:[%s5189_s1 + $0x3c0] sm:$0xff]  ;;  %v991_v8 = vld [vmem:[%s5189_s1 + $0x2d0] sm:$0xff] }
 0x179   :  { %v3215_v63 = vpack.c.bf16 %v989_v60, %v988_v58  ;;  %v1362_v11 = vld [vmem:[%s5189_s1 + $0x3e0] sm:$0xff]  ;;  %v3583_v58 = vmov 1966171168  }
 0x17a   :  { %v461_v19 = vrot.slane %v460_v13, 2  ;;  %v438_v21 = vrot.slane %v437_v16, 2  ;;  %v422_v22 = vadd.f32 %v421_v17, %v420_v12  ;;  %v477_v23 = vadd.f32 %v476_v18, %v475_v10  ;;  %v1363_v12 = vld [vmem:[%s5189_s1 + $0x3f0] sm:$0xff]  ;;  %v992_v17 = vld [vmem:[%s5189_s1 + $0x2e0] sm:$0xff] }
 0x17b   :  { %v3242_v10 = vpack.c.bf16 %v1361_v4, %v1360_v61  ;;  %v993_v18 = vld [vmem:[%s5189_s1 + $0x2f0] sm:$0xff]  ;;  %v646_v60 = vunpack.c.l.s4 %v3583_v58 }
 0x17c   :  { %v439_v24 = vadd.f32 %v438_v21, %v437_v16  ;;  %v478_v26 = vrot.slane %v477_v23, 2  ;;  %v462_v27 = vadd.f32 %v461_v19, %v460_v13  ;;  %v423_v1 = vrot.slane %v422_v22, 1  ;;  %v1364_v19 = vld [vmem:[%s5189_s1 + $0x400] sm:$0xff]  ;;  %v1365_v21 = vld [vmem:[%s5189_s1 + $0x410] sm:$0xff] }
 0x17d   :  { %v3218_v13 = vpack.c.bf16 %v991_v8, %v990_v6  ;;  %v3245_v16 = vpack.c.bf16 %v1363_v12, %v1362_v11  ;;  %v647_v61 = vunpack.c.0.s8 %v646_v60  ;;  %v2618_v11 = vld [vmem:[%s5191_s3 + $0x1] ss:$8 sm:$0x3] }
 0x17e   :  { %v440_v0 = vrot.slane %v439_v24, 1  ;;  %v479_v28 = vadd.f32 %v478_v26, %v477_v23  ;;  %v463_v29 = vrot.slane %v462_v27, 1  ;;  %v424_v32 = vadd.f32 %v423_v1, %v422_v22  ;;  %v995_v26 = vld [vmem:[%s5189_s1 + $0x310] sm:$0xff] }
 0x17f   :  { %v3221_v22 = vpack.c.bf16 %v993_v18, %v992_v17  ;;  %v3248_v23 = vpack.c.bf16 %v1365_v21, %v1364_v19  ;;  %v1367_v1 = vld [vmem:[%s5189_s1 + $0x430] sm:$0xff]  ;;  %v650_v4 = vsub.s32 %v647_v61, %v3998_v51  ;;  %v3584_v18 = vmov 1983009808  }
 0x180   :  { %v441_v30 = vadd.f32 %v440_v0, %v439_v24  ;;  %v480_v31 = vrot.slane %v479_v28, 1  ;;  %v464_v34 = vadd.f32 %v463_v29, %v462_v27  ;;  %v994_v24 = vld [vmem:[%s5189_s1 + $0x300] sm:$0xff]  ;;  %v757_v19 = vunpack.c.l.s4 %v3584_v18 }
 0x181   :  { %v1366_v27 = vld [vmem:[%s5189_s1 + $0x420] sm:$0xff]  ;;  %v3224_v0 = vpack.c.bf16 %v995_v26, %v994_v24 }
 0x182   :  { %2616 = vmatprep.mubr.msk.f32.mxu1 %vm366_vm11, %v441_v30  ;;  %v481_v33 = vadd.f32 %v480_v31, %v479_v28  ;;  %v3251_v28 = vpack.c.bf16 %v1367_v1, %v1366_v27  ;;  %v996_v29 = vld [vmem:[%s5189_s1 + $0x320] sm:$0xff]  ;;  %v997_v30 = vld [vmem:[%s5189_s1 + $0x330] sm:$0xff]  ;;  %v758_v24 = vunpack.c.0.s8 %v757_v19 }
 0x183   :  { %550 = vmatmul.mubr.f32.vlgmr.msra.gmra.mrb[0].mxu1 %v424_v32  ;;  %v1368_v31 = vld [vmem:[%s5189_s1 + $0x440] sm:$0xff]  ;;  %v1369_v32 = vld [vmem:[%s5189_s1 + $0x450] sm:$0xff] }
 0x184   :  { %2617 = vmatprep.mubr.msk.f32.mxu0 %vm366_vm11, %v481_v33  ;;  %3207 = vmatpush1.bf16.msra.mxu1 %v3206_v35  ;;  %v3227_v33 = vpack.c.bf16 %v997_v30, %v996_v29  ;;  %v1371_v35 = vld [vmem:[%s5189_s1 + $0x470] sm:$0xff]  ;;  %v2619_v27 = vld [vmem:[%s5191_s3 + $0x2] ss:$8 sm:$0x3] }
 0x185   :  { %624 = vmatmul.mubr.f32.vlgmr.msra.gmra.mrb[12].mxu0 %v464_v34  ;;  %3208 = vmatprep.subr.bf16.mxu1 %v3582_v40  ;;  %v3254_v34 = vpack.c.bf16 %v1369_v32, %v1368_v31 }
 0x186   :  { %3234 = vmatpush1.bf16.msra.mxu0 %v3233_v2  ;;  %v3257_v2 = vpack.c.bf16 %v1371_v35, %v1370_v38 }
 0x187   :  { %3235 = vmatprep.subr.bf16.mxu0 %v3582_v40 }
 0x188   :  { %3210 = vmatpush1.bf16.msra.mxu1 %v3209_v43 }
 0x189   :  { %3211 = vmatprep.subr.bf16.mxu1 %v3582_v40 }
 0x18a   :  { %3237 = vmatpush1.bf16.msra.mxu0 %v3236_v48 }
 0x18b   :  { %3238 = vmatprep.subr.bf16.mxu0 %v3582_v40 }
 0x18c   :  { %3213 = vmatpush1.bf16.msra.mxu1 %v3212_v15 }
 0x18d   :  { %3214 = vmatprep.subr.bf16.mxu1 %v3582_v40 }
 0x18e   :  { %3240 = vmatpush1.bf16.msra.mxu0 %v3239_v56 }
 0x18f   :  { %3241 = vmatprep.subr.bf16.mxu0 %v3582_v40 }
 0x190   :  { %3216 = vmatpush1.bf16.msra.mxu1 %v3215_v63 }
 0x191   :  { %3217 = vmatprep.subr.bf16.mxu1 %v3582_v40 }
 0x192   :  { %3243 = vmatpush1.bf16.msra.mxu0 %v3242_v10 }
 0x193   :  { %3244 = vmatprep.subr.bf16.mxu0 %v3582_v40 }
 0x194   :  { %3219 = vmatpush1.bf16.msra.mxu1 %v3218_v13 }
 0x195   :  { %3220 = vmatprep.subr.bf16.mxu1 %v3582_v40 }
 0x196   :  { %3246 = vmatpush1.bf16.msra.mxu0 %v3245_v16 }
 0x197   :  { %3247 = vmatprep.subr.bf16.mxu0 %v3582_v40 }
 0x198   :  { %3222 = vmatpush1.bf16.msra.mxu1 %v3221_v22 }
 0x199   :  { %3223 = vmatprep.subr.bf16.mxu1 %v3582_v40 }
 0x19a   :  { %3249 = vmatpush1.bf16.msra.mxu0 %v3248_v23 }
 0x19b   :  { %3250 = vmatprep.subr.bf16.mxu0 %v3582_v40 }
 0x19c   :  { %3225 = vmatpush1.bf16.msra.mxu1 %v3224_v0  ;;  %v4295_v0 = vsub.s32 %v758_v24, %v3998_v51 }
 0x19d   :  { %3226 = vmatprep.subr.bf16.mxu1 %v3582_v40 }
 0x19e   :  { %3252 = vmatpush1.bf16.msra.mxu0 %v3251_v28  ;;  %v4298_v28 = vsub.s32 2, %v3998_v51 }
 0x19f   :  { %3253 = vmatprep.subr.bf16.mxu0 %v3582_v40 }
 0x1a0   :  { %3228 = vmatpush1.bf16.msra.mxu1 %v3227_v33 }
 0x1a1   :  { %3229 = vmatprep.subr.bf16.mxu1 %v3582_v40 }
 0x1a2   :  { %3255 = vmatpush1.bf16.msra.mxu0 %v3254_v34 }
 0x1a3   :  { %3256 = vmatprep.subr.bf16.mxu0 %v3582_v40 }
 0x1a4   :  { %3231 = vmatpush1.bf16.msra.mxu1 %v3230_v39 }
 0x1a6   :  { %3258 = vmatpush1.bf16.msra.mxu0 %v3257_v2 }
 0x1a7   :  { %3315 = vmatprep.subr.bf16.mxu0 %v3582_v40 }
 0x256   :  { %v551_v14 = vpop.f32.mrb[0].mxu1 }
 0x257   :  { %v630_v41 = vmul.f32 %v551_v14, %v551_v14  ;;  %v553_v42 = vpop.f32.mrb[1].mxu1 }
 0x258   :  { %v631_v43 = vmul.f32 %v553_v42, %v553_v42  ;;  %v625_v47 = vpop.f32.mrb[12].mxu0 }
 0x259   :  { %v632_v48 = vsub.f32 %v625_v47, %v630_v41  ;;  %v627_v49 = vpop.f32.mrb[13].mxu0 }
 0x25a   :  { %v633_v50 = vsub.f32 %v627_v49, %v631_v43 }
 0x25b   :  { %v634_v53 = vmax.f32 %v632_v48, 0.0 }
 0x25c   :  { %v635_v15 = vmax.f32 %v633_v50, 0.0 }
 0x25d   :  { %v638_v55 = vadd.f32 1e-05, %v634_v53 }
 0x25e   :  { %v639_v56 = vadd.f32 1e-05, %v635_v15 }
 0x25f   :  { %3547 = vrsqrt.f32 %v638_v55 }
 0x260   :  { %3549 = vrsqrt.f32 %v639_v56 }
 0x269   :  { %v3548_v63 = vpop.eup %3547 }
 0x26a   :  { %v3550_v6 = vpop.eup %3549 }
 0x26b   :  { %v644_v8 = vcombine.low %v3548_v63, %v3550_v6 }
 0x26d   :  { %v651_v10 = vrot.slane %v644_v8, %v650_v4 }
 0x26f   :  { %v658_v12 = vrot.slane %v651_v10, %v650_v4 }
 0x271   :  { %v660_v13 = vmul.f32 %v2618_v11, %v658_v12 }
 0x273   :  { %v667_v16 = vrot.slane %v660_v13, %v4001_v52  ;;  %v4288_v17 = vrot.slane %v660_v13, %v4007_v54 }
 0x275   :  { %v674_v21 = vmul.f32 %v667_v16, %v551_v14  ;;  %v675_v22 = vmul.f32 %v4288_v17, %v553_v42  ;;  %v695_v30 = vmul.f32 %v667_v16, %v4016_v57  ;;  %v696_v31 = vmul.f32 %v4288_v17, %v4019_v59 }
 0x276   :  { %v697_v32 = vmul.f32 %v667_v16, %v4031_v45  ;;  %v698_v33 = vmul.f32 %v4288_v17, %v4034_v62  ;;  %v699_v34 = vmul.f32 %v667_v16, %v4046_v3  ;;  %v700_v38 = vmul.f32 %v4288_v17, %v4049_v5 }
 0x277   :  { %v678_v23 = vcombine.low %v674_v21, %v675_v22  ;;  %v701_v57 = vmul.f32 %v667_v16, %v4061_v7  ;;  %v702_v59 = vmul.f32 %v4288_v17, %v4064_v9  ;;  %v4319_v45 = vmul.f32 %v667_v16, %v4090_v20 }
 0x278   :  { %v4323_v62 = vmul.f32 %v4288_v17, %v4098_v25  ;;  %v4326_v3 = vmul.f32 %v667_v16, %v4130_v44 }
 0x279   :  { %v685_v26 = vrot.slane %v678_v23, %v650_v4 }
 0x27b   :  { %v692_v1 = vrot.slane %v685_v26, %v650_v4 }
 0x27d   :  { %v694_v29 = vsub.f32 %v2619_v27, %v692_v1 }
 0x27f   :  { %v4308_v36 = vrot.slane %v694_v29, %v4001_v52  ;;  %v4311_v37 = vrot.slane %v694_v29, %v4007_v54 }
 0x281   :  { %v718_v35 = vadd.f32 %v4308_v36, %v695_v30  ;;  %v719_v39 = vadd.f32 %v4311_v37, %v696_v31  ;;  %v720_v5 = vadd.f32 %v4308_v36, %v697_v32  ;;  %v721_v7 = vadd.f32 %v4311_v37, %v698_v33 }
 0x282   :  { %v722_v9 = vadd.f32 %v4308_v36, %v699_v34  ;;  %v723_v20 = vadd.f32 %v4311_v37, %v700_v38  ;;  %v724_v2 = vadd.f32 %v4308_v36, %v701_v57  ;;  %v725_v25 = vadd.f32 %v4311_v37, %v702_v59 }
 0x283   :  { %v730_v14 = vmax.f32 %v718_v35, 0.0  ;;  %v731_v41 = vmax.f32 %v719_v39, 0.0  ;;  %v732_v44 = vmax.f32 %v720_v5, 0.0  ;;  %v733_v42 = vmax.f32 %v721_v7, 0.0 }
 0x284   :  { %v734_v43 = vmax.f32 %v722_v9, 0.0  ;;  %v735_v47 = vmax.f32 %v723_v20, 0.0  ;;  %v736_v48 = vmax.f32 %v724_v2, 0.0  ;;  %v737_v49 = vmax.f32 %v725_v25, 0.0 }
 0x285   :  { %v754_v50 = vcombine.low %v730_v14, %v731_v41  ;;  %v755_v53 = vcombine.high %v730_v14, %v731_v41  ;;  %v772_v15 = vcombine.low %v732_v44, %v733_v42  ;;  %v773_v55 = vcombine.high %v732_v44, %v733_v42 }
 0x286   :  { %v790_v56 = vcombine.low %v734_v43, %v735_v47  ;;  %v791_v58 = vcombine.high %v734_v43, %v735_v47  ;;  %v808_v60 = vcombine.low %v736_v48, %v737_v49  ;;  %v809_v61 = vcombine.high %v736_v48, %v737_v49 }
 0x287   :  { %v762_v63 = vrot.slane %v754_v50, %v4295_v0  ;;  %v769_v4 = vrot.slane %v755_v53, %v4295_v0  ;;  %v780_v6 = vrot.slane %v772_v15, %v4295_v0  ;;  %v787_v8 = vrot.slane %v773_v55, %v4295_v0 }
 0x288   :  { %v4341_v10 = vrot.slane %v790_v56, %v4295_v0  ;;  %v4344_v11 = vrot.slane %v791_v58, %v4295_v0  ;;  %v4347_v12 = vrot.slane %v808_v60, %v4295_v0  ;;  %v4350_v13 = vrot.slane %v809_v61, %v4295_v0 }
 0x289   :  { %v770_v16 = vcombine.high %v762_v63, %v762_v63  ;;  %v771_v18 = vcombine.high %v769_v4, %v769_v4  ;;  %v788_v19 = vcombine.high %v780_v6, %v780_v6  ;;  %v789_v21 = vcombine.high %v787_v8, %v787_v8 }
 0x28a   :  { %v2620_v22 = vrot.slane %v762_v63, 9  ;;  %v2622_v23 = vrot.slane %v769_v4, 9  ;;  %v2624_v24 = vrot.slane %v780_v6, 9  ;;  %v2626_v26 = vrot.slane %v787_v8, 9 }
 0x28b   :  { %v2621_v27 = vrot.slane %v770_v16, 9  ;;  %v2623_v1 = vrot.slane %v771_v18, 9  ;;  %v2625_v29 = vrot.slane %v788_v19, 9  ;;  %v2627_v30 = vrot.slane %v789_v21, 9 }
 0x28c   :  { %v958_v31 = vmax.f32 %v762_v63, %v2620_v22  ;;  %v960_v32 = vmax.f32 %v769_v4, %v2622_v23  ;;  %v962_v33 = vmax.f32 %v780_v6, %v2624_v24  ;;  %v964_v34 = vmax.f32 %v787_v8, %v2626_v26 }
 0x28d   :  { %v959_v38 = vmax.f32 %v770_v16, %v2621_v27  ;;  %v961_v57 = vmax.f32 %v771_v18, %v2623_v1  ;;  %v963_v59 = vmax.f32 %v788_v19, %v2625_v29  ;;  %v965_v35 = vmax.f32 %v789_v21, %v2627_v30 }
 0x28e   :  { %v1031_v39 = vrot.slane %v958_v31, %v4298_v28  ;;  %v1047_v5 = vrot.slane %v960_v32, %v4298_v28  ;;  %v1063_v7 = vrot.slane %v962_v33, %v4298_v28  ;;  %v1079_v9 = vrot.slane %v964_v34, %v4298_v28 }
 0x28f   :  { %v1039_v20 = vrot.slane %v959_v38, %v4298_v28  ;;  %v1055_v2 = vrot.slane %v961_v57, %v4298_v28  ;;  %v1071_v25 = vrot.slane %v963_v59, %v4298_v28  ;;  %v1087_v14 = vrot.slane %v965_v35, %v4298_v28 }
 0x290   :  { %v1027_v41 = vrot.slane %v958_v31, %v4001_v52  ;;  %v1035_v44 = vrot.slane %v959_v38, %v4001_v52  ;;  %v1043_v42 = vrot.slane %v960_v32, %v4001_v52  ;;  %v1051_v43 = vrot.slane %v961_v57, %v4001_v52 }
 0x291   :  { %v1230_v47 = vsel %vm1216_vm12, %v1039_v20, %v1031_v39  ;;  %v1059_v48 = vrot.slane %v962_v33, %v4001_v52  ;;  %v1067_v49 = vrot.slane %v963_v59, %v4001_v52  ;;  %v1075_v50 = vrot.slane %v964_v34, %v4001_v52 }
 0x292   :  { %v1231_v53 = vsel %vm1218_vm13, %v1047_v5, %v1230_v47  ;;  %v1083_v15 = vrot.slane %v965_v35, %v4001_v52  ;;  %v1217_v55 = vsel %vm1216_vm12, %v1035_v44, %v1027_v41  ;;  %v806_v56 = vcombine.high %v4341_v10, %v4341_v10 }
 0x293   :  { %v1232_v58 = vsel %vm1220_vm14, %v1055_v2, %v1231_v53  ;;  %v1219_v60 = vsel %vm1218_vm13, %v1043_v42, %v1217_v55  ;;  %v807_v61 = vcombine.high %v4344_v11, %v4344_v11  ;;  %v824_v63 = vcombine.high %v4347_v12, %v4347_v12 }
 0x294   :  { %v1233_v4 = vsel %vm1222_vm15, %v1063_v7, %v1232_v58  ;;  %v1221_v6 = vsel %vm1220_vm14, %v1051_v43, %v1219_v60  ;;  %v825_v8 = vcombine.high %v4350_v13, %v4350_v13  ;;  %v2628_v16 = vrot.slane %v4341_v10, 9 }
 0x295   :  { %v1234_v18 = vsel %vm1224_vm0, %v1071_v25, %v1233_v4  ;;  %v1223_v19 = vsel %vm1222_vm15, %v1059_v48, %v1221_v6  ;;  %v2629_v21 = vrot.slane %v806_v56, 9  ;;  %v2630_v22 = vrot.slane %v4344_v11, 9 }
 0x296   :  { %v1235_v23 = vsel %vm1226_vm1, %v1079_v9, %v1234_v18  ;;  %v1225_v24 = vsel %vm1224_vm0, %v1067_v49, %v1223_v19  ;;  %v2631_v26 = vrot.slane %v807_v61, 9  ;;  %v2632_v27 = vrot.slane %v4347_v12, 9 }
 0x297   :  { %v1236_v1 = vsel %vm1228_vm2, %v1087_v14, %v1235_v23  ;;  %v1227_v29 = vsel %vm1226_vm1, %v1075_v50, %v1225_v24  ;;  %v2633_v30 = vrot.slane %v824_v63, 9  ;;  %v2634_v31 = vrot.slane %v4350_v13, 9 }
 0x298   :  { %2644 = vmatprep.mubr.msk.f32.mxu1 %vm366_vm11, %v1236_v1  ;;  %2647 = vmatprep.mubr.msk.f32.mxu0 %vm366_vm11, %v1236_v1  ;;  %v1229_v32 = vsel %vm1228_vm2, %v1083_v15, %v1227_v29  ;;  %v2635_v33 = vrot.slane %v825_v8, 9  ;;  %v966_v34 = vmax.f32 %v4341_v10, %v2628_v16  ;;  %v967_v38 = vmax.f32 %v806_v56, %v2629_v21 }
 0x299   :  { %1339 = vmatmul.mubr.f32.vlgmr.msra.gmra.mrb[2].mxu1 %v1229_v32  ;;  %1437 = vmatmul.mubr.f32.vlgmr.msra.gmra.mrb[14].mxu0 %v1229_v32  ;;  %v968_v57 = vmax.f32 %v4344_v11, %v2630_v22  ;;  %v969_v59 = vmax.f32 %v807_v61, %v2631_v26  ;;  %v970_v35 = vmax.f32 %v4347_v12, %v2632_v27 }
 0x29a   :  { %v971_v39 = vmax.f32 %v824_v63, %v2633_v30  ;;  %v972_v5 = vmax.f32 %v4350_v13, %v2634_v31  ;;  %v973_v7 = vmax.f32 %v825_v8, %v2635_v33  ;;  %v706_v9 = vmul.f32 %v4288_v17, %v4134_v46 }
 0x29b   :  { %v1095_v20 = vrot.slane %v966_v34, %v4298_v28  ;;  %v1103_v2 = vrot.slane %v967_v38, %v4298_v28  ;;  %v1111_v10 = vrot.slane %v968_v57, %v4298_v28  ;;  %v1119_v25 = vrot.slane %v969_v59, %v4298_v28 }
 0x29c   :  { %v1127_v11 = vrot.slane %v970_v35, %v4298_v28  ;;  %v1135_v14 = vrot.slane %v971_v39, %v4298_v28  ;;  %v1143_v12 = vrot.slane %v972_v5, %v4298_v28  ;;  %v1151_v13 = vrot.slane %v973_v7, %v4298_v28 }
 0x29d   :  { %v1244_v41 = vsel %vm1216_vm12, %v1103_v2, %v1095_v20  ;;  %v1091_v46 = vrot.slane %v966_v34, %v4001_v52  ;;  %v1099_v17 = vrot.slane %v967_v38, %v4001_v52  ;;  %v1107_v44 = vrot.slane %v968_v57, %v4001_v52 }
 0x29e   :  { %v1245_v42 = vsel %vm1218_vm13, %v1111_v10, %v1244_v41  ;;  %v1115_v43 = vrot.slane %v969_v59, %v4001_v52  ;;  %v1123_v47 = vrot.slane %v970_v35, %v4001_v52  ;;  %v1131_v48 = vrot.slane %v971_v39, %v4001_v52 }
 0x29f   :  { %v1246_v49 = vsel %vm1220_vm14, %v1119_v25, %v1245_v42  ;;  %v1139_v50 = vrot.slane %v972_v5, %v4001_v52  ;;  %v1237_v53 = vsel %vm1216_vm12, %v1099_v17, %v1091_v46  ;;  %v726_v15 = vadd.f32 %v4308_v36, %v4319_v45 }
 0x2a0   :  { %v1247_v55 = vsel %vm1222_vm15, %v1127_v11, %v1246_v49  ;;  %v1238_v56 = vsel %vm1218_vm13, %v1107_v44, %v1237_v53  ;;  %v727_v58 = vadd.f32 %v4311_v37, %v4323_v62  ;;  %v728_v60 = vadd.f32 %v4308_v36, %v4326_v3 }
 0x2a1   :  { %v1248_v61 = vsel %vm1224_vm0, %v1135_v14, %v1247_v55  ;;  %v1239_v63 = vsel %vm1220_vm14, %v1115_v43, %v1238_v56  ;;  %v729_v4 = vadd.f32 %v4311_v37, %v706_v9  ;;  %v738_v6 = vmax.f32 %v726_v15, 0.0 }
 0x2a2   :  { %v1249_v8 = vsel %vm1226_vm1, %v1143_v12, %v1248_v61  ;;  %v1240_v45 = vsel %vm1222_vm15, %v1123_v47, %v1239_v63  ;;  %v739_v16 = vmax.f32 %v727_v58, 0.0  ;;  %v740_v18 = vmax.f32 %v728_v60, 0.0 }
 0x2a3   :  { %v1250_v19 = vsel %vm1228_vm2, %v1151_v13, %v1249_v8  ;;  %v1147_v62 = vrot.slane %v973_v7, %v4001_v52  ;;  %v1241_v21 = vsel %vm1224_vm0, %v1131_v48, %v1240_v45  ;;  %v741_v36 = vmax.f32 %v729_v4, 0.0 }
 0x2a4   :  { %2645 = vmatprep.mubr.msk.f32.mxu1 %vm366_vm11, %v1250_v19  ;;  %2648 = vmatprep.mubr.msk.f32.mxu0 %vm366_vm11, %v1250_v19  ;;  %v1242_v37 = vsel %vm1226_vm1, %v1139_v50, %v1241_v21  ;;  %v826_v3 = vcombine.low %v738_v6, %v739_v16  ;;  %v827_v22 = vcombine.high %v738_v6, %v739_v16 }
 0x2a5   :  { %v1243_v23 = vsel %vm1228_vm2, %v1147_v62, %v1242_v37  ;;  %v844_v24 = vcombine.low %v740_v18, %v741_v36  ;;  %v845_v26 = vcombine.high %v740_v18, %v741_v36 }
 0x2a6   :  { %1344 = vmatmul.mubr.f32.gmra.mrb[4].mxu1 %v1243_v23  ;;  %1442 = vmatmul.mubr.f32.gmra.mrb[16].mxu0 %v1243_v23  ;;  %v834_v27 = vrot.slane %v826_v3, %v4295_v0  ;;  %v841_v1 = vrot.slane %v827_v22, %v4295_v0  ;;  %v1574_v22 = vld [vmem:[%s5190_s2 + $0x80] sm:$0xff]  ;;  %v1575_v23 = vld [vmem:[%s5190_s2 + $0x88] sm:$0xff] }
 0x2a7   :  { %v852_v29 = vrot.slane %v844_v24, %v4295_v0  ;;  %v859_v30 = vrot.slane %v845_v26, %v4295_v0  ;;  %v1558_v24 = vld [vmem:[%s5190_s2] sm:$0xff]  ;;  %v3259_v26 = vpack.c.bf16 %v1575_v23, %v1574_v22 }
 0x2a8   :  { %v842_v31 = vcombine.high %v834_v27, %v834_v27  ;;  %v843_v32 = vcombine.high %v841_v1, %v841_v1  ;;  %v2636_v33 = vrot.slane %v834_v27, 9  ;;  %v2638_v34 = vrot.slane %v841_v1, 9 }
 0x2a9   :  { %v860_v38 = vcombine.high %v852_v29, %v852_v29  ;;  %v861_v57 = vcombine.high %v859_v30, %v859_v30  ;;  %v2640_v59 = vrot.slane %v852_v29, 9  ;;  %v2642_v9 = vrot.slane %v859_v30, 9  ;;  %3260 = vmatprep.subr.bf16.mxu1 %v3259_v26 }
 0x2aa   :  { %v2637_v35 = vrot.slane %v842_v31, 9  ;;  %v2639_v39 = vrot.slane %v843_v32, 9  ;;  %v974_v5 = vmax.f32 %v834_v27, %v2636_v33  ;;  %v976_v20 = vmax.f32 %v841_v1, %v2638_v34  ;;  %v1559_v27 = vld [vmem:[%s5190_s2 + $0x8] sm:$0xff]  ;;  %v1576_v1 = vld [vmem:[%s5190_s2 + $0x90] sm:$0xff]  ;;  %v1561_v33 = vld [vmem:[%s5190_s2 + $0x18] sm:$0xff] }
 0x2ab   :  { %v2641_v7 = vrot.slane %v860_v38, 9  ;;  %v2643_v2 = vrot.slane %v861_v57, 9  ;;  %v978_v11 = vmax.f32 %v852_v29, %v2640_v59  ;;  %v980_v46 = vmax.f32 %v859_v30, %v2642_v9  ;;  %v1577_v29 = vld [vmem:[%s5190_s2 + $0x98] sm:$0xff]  ;;  %v1578_v34 = vld [vmem:[%s5190_s2 + $0xa0] sm:$0xff] }
 0x2ac   :  { %v975_v10 = vmax.f32 %v842_v31, %v2637_v35  ;;  %v977_v25 = vmax.f32 %v843_v32, %v2639_v39  ;;  %v1159_v12 = vrot.slane %v974_v5, %v4298_v28  ;;  %v1175_v17 = vrot.slane %v976_v20, %v4298_v28  ;;  %v1560_v32 = vld [vmem:[%s5190_s2 + $0x10] sm:$0xff]  ;;  %v1562_v35 = vld [vmem:[%s5190_s2 + $0x20] sm:$0xff]  ;;  %v1563_v39 = vld [vmem:[%s5190_s2 + $0x28] sm:$0xff] }
 0x2ad   :  { %v979_v14 = vmax.f32 %v860_v38, %v2641_v7  ;;  %v1155_v44 = vrot.slane %v974_v5, %v4001_v52  ;;  %v981_v42 = vmax.f32 %v861_v57, %v2643_v2  ;;  %v1171_v48 = vrot.slane %v976_v20, %v4001_v52  ;;  %v1579_v38 = vld [vmem:[%s5190_s2 + $0xa8] sm:$0xff]  ;;  %v1580_v5 = vld [vmem:[%s5190_s2 + $0xb0] sm:$0xff]  ;;  %v1581_v7 = vld [vmem:[%s5190_s2 + $0xb8] sm:$0xff] }
 0x2ae   :  { %v1167_v13 = vrot.slane %v975_v10, %v4298_v28  ;;  %v1163_v41 = vrot.slane %v975_v10, %v4001_v52  ;;  %v1183_v43 = vrot.slane %v977_v25, %v4298_v28  ;;  %v1191_v49 = vrot.slane %v978_v11, %v4298_v28  ;;  %v1564_v2 = vld [vmem:[%s5190_s2 + $0x30] sm:$0xff]  ;;  %v1565_v10 = vld [vmem:[%s5190_s2 + $0x38] sm:$0xff] }
 0x2af   :  { %v1179_v53 = vrot.slane %v977_v25, %v4001_v52  ;;  %v1199_v55 = vrot.slane %v979_v14, %v4298_v28  ;;  %v1187_v58 = vrot.slane %v978_v11, %v4001_v52  ;;  %v1207_v61 = vrot.slane %v980_v46, %v4298_v28  ;;  %v1582_v25 = vld [vmem:[%s5190_s2 + $0xc0] sm:$0xff]  ;;  %v1583_v11 = vld [vmem:[%s5190_s2 + $0xc8] sm:$0xff] }
 0x2b0   :  { %v1258_v47 = vsel %vm1216_vm12, %v1167_v13, %v1159_v12  ;;  %v1251_v15 = vsel %vm1216_vm12, %v1163_v41, %v1155_v44  ;;  %v1195_v4 = vrot.slane %v979_v14, %v4001_v52  ;;  %v1215_v8 = vrot.slane %v981_v42, %v4298_v28  ;;  %v1566_v13 = vld [vmem:[%s5190_s2 + $0x40] sm:$0xff]  ;;  %v1567_v41 = vld [vmem:[%s5190_s2 + $0x48] sm:$0xff] }
 0x2b1   :  { %v1259_v50 = vsel %vm1218_vm13, %v1175_v17, %v1258_v47  ;;  %v1252_v60 = vsel %vm1218_vm13, %v1171_v48, %v1251_v15  ;;  %v1203_v16 = vrot.slane %v980_v46, %v4001_v52  ;;  %v1211_v62 = vrot.slane %v981_v42, %v4001_v52  ;;  %v1584_v46 = vld [vmem:[%s5190_s2 + $0xd0] sm:$0xff]  ;;  %v1585_v17 = vld [vmem:[%s5190_s2 + $0xd8] sm:$0xff]  ;;  %v1586_v48 = vld [vmem:[%s5190_s2 + $0xe0] sm:$0xff] }
 0x2b2   :  { %v1260_v56 = vsel %vm1220_vm14, %v1183_v43, %v1259_v50  ;;  %v1253_v6 = vsel %vm1220_vm14, %v1179_v53, %v1252_v60  ;;  %v3261_v30 = vpack.c.bf16 %v1559_v27, %v1558_v24  ;;  %v3263_v31 = vpack.c.bf16 %v1577_v29, %v1576_v1  ;;  %v1568_v43 = vld [vmem:[%s5190_s2 + $0x50] sm:$0xff]  ;;  %v1569_v47 = vld [vmem:[%s5190_s2 + $0x58] sm:$0xff]  ;;  %v1570_v15 = vld [vmem:[%s5190_s2 + $0x60] sm:$0xff] }
 0x2b3   :  { %v1261_v63 = vsel %vm1222_vm15, %v1191_v49, %v1260_v56  ;;  %v1254_v18 = vsel %vm1222_vm15, %v1187_v58, %v1253_v6  ;;  %v3265_v57 = vpack.c.bf16 %v1561_v33, %v1560_v32  ;;  %v3267_v59 = vpack.c.bf16 %v1579_v38, %v1578_v34  ;;  %v1587_v49 = vld [vmem:[%s5190_s2 + $0xe8] sm:$0xff]  ;;  %v1590_v27 = vld [vmem:[%s5190_s2 + $0x100] sm:$0xff]  ;;  %v1592_v24 = vld [vmem:[%s5190_s2 + $0x110] sm:$0xff] }
 0x2b4   :  { %v1262_v45 = vsel %vm1224_vm0, %v1199_v55, %v1261_v63  ;;  %v1255_v21 = vsel %vm1224_vm0, %v1195_v4, %v1254_v18  ;;  %3262 = vmatpush3.bf16.msra.mxu1 %v3261_v30  ;;  %v3269_v9 = vpack.c.bf16 %v1563_v39, %v1562_v35  ;;  %v3271_v20 = vpack.c.bf16 %v1581_v7, %v1580_v5  ;;  %v1571_v55 = vld [vmem:[%s5190_s2 + $0x68] sm:$0xff]  ;;  %v1572_v18 = vld [vmem:[%s5190_s2 + $0x70] sm:$0xff]  ;;  %v1594_v35 = vld [vmem:[%s5190_s2 + $0x120] sm:$0xff] }
 0x2b5   :  { %v1263_v19 = vsel %vm1226_vm1, %v1207_v61, %v1262_v45  ;;  %v1256_v37 = vsel %vm1226_vm1, %v1203_v16, %v1255_v21  ;;  %3264 = vmatprep.subr.bf16.mxu1 %v3263_v31  ;;  %v3273_v14 = vpack.c.bf16 %v1565_v10, %v1564_v2  ;;  %v3275_v12 = vpack.c.bf16 %v1583_v11, %v1582_v25  ;;  %v1588_v45 = vld [vmem:[%s5190_s2 + $0xf0] sm:$0xff]  ;;  %v1589_v16 = vld [vmem:[%s5190_s2 + $0xf8] sm:$0xff]  ;;  %v1591_v1 = vld [vmem:[%s5190_s2 + $0x108] sm:$0xff] }
 0x2b6   :  { %v1264_v36 = vsel %vm1228_vm2, %v1215_v8, %v1263_v19  ;;  %v1257_v3 = vsel %vm1228_vm2, %v1211_v62, %v1256_v37  ;;  %v3277_v44 = vpack.c.bf16 %v1567_v41, %v1566_v13  ;;  %v3279_v42 = vpack.c.bf16 %v1585_v17, %v1584_v46  ;;  %v1573_v21 = vld [vmem:[%s5190_s2 + $0x78] sm:$0xff] }
 0x2b7   :  { %2646 = vmatprep.mubr.msk.f32.mxu1 %vm366_vm11, %v1264_v36  ;;  %2649 = vmatprep.mubr.msk.f32.mxu0 %vm366_vm11, %v1264_v36  ;;  %v3281_v50 = vpack.c.bf16 %v1569_v47, %v1568_v43  ;;  %v3283_v53 = vpack.c.bf16 %v1587_v49, %v1586_v48  ;;  %v3285_v56 = vpack.c.bf16 %v1571_v55, %v1570_v15 }
 0x2b8   :  { %1349 = vmatmul.mubr.f32.gmra.mrb[6].mxu1 %v1257_v3  ;;  %1447 = vmatmul.mubr.f32.gmra.mrb[18].mxu0 %v1257_v3  ;;  %v3287_v62 = vpack.c.bf16 %v1589_v16, %v1588_v45  ;;  %v3289_v3 = vpack.c.bf16 %v1573_v21, %v1572_v18  ;;  %v4601_v38 = vpack.c.bf16 %v1591_v1, %v1590_v27 }
 0x2b9   :  { %3266 = vmatpush3.bf16.msra.mxu1 %v3265_v57 }
 0x2ba   :  { %3268 = vmatprep.subr.bf16.mxu1 %v3267_v59 }
 0x2bd   :  { %3270 = vmatpush3.bf16.msra.mxu1 %v3269_v9 }
 0x2be   :  { %3272 = vmatprep.subr.bf16.mxu1 %v3271_v20 }
 0x2c1   :  { %3274 = vmatpush3.bf16.msra.mxu1 %v3273_v14 }
 0x2c2   :  { %3276 = vmatprep.subr.bf16.mxu1 %v3275_v12 }
 0x2c5   :  { %3278 = vmatpush3.bf16.msra.mxu1 %v3277_v44 }
 0x2c6   :  { %3280 = vmatprep.subr.bf16.mxu1 %v3279_v42 }
 0x2c9   :  { %3282 = vmatpush3.bf16.msra.mxu1 %v3281_v50 }
 0x2ca   :  { %3284 = vmatprep.subr.bf16.mxu1 %v3283_v53 }
 0x2cd   :  { %3286 = vmatpush3.bf16.msra.mxu1 %v3285_v56 }
 0x2ce   :  { %3288 = vmatprep.subr.bf16.mxu1 %v3287_v62 }
 0x2d1   :  { %3290 = vmatpush3.bf16.msra.mxu1 %v3289_v3 }
 0x2d2   :  { %3292 = vmatprep.subr.bf16.mxu1 %v4601_v38 }
 0x36c   :  { %v1340_v58 = vpop.f32.mrb[2].mxu1  ;;  %v1438_v60 = vpop.f32.mrb[14].mxu0 }
 0x36d   :  { %v4561_v61 = vmax.f32 %v1340_v58, %v1438_v60  ;;  %v1342_v63 = vpop.f32.mrb[3].mxu1  ;;  %v1440_v4 = vpop.f32.mrb[15].mxu0 }
 0x36f   :  { %v4565_v6 = vcombine.high %v4561_v61, %v4561_v61  ;;  %v2652_v57 = vrot.slane %v4561_v61, 10  ;;  %v2650_v59 = vrot.slane %v4561_v61, 9  ;;  %v2654_v7 = vrot.slane %v4561_v61, 11 }
 0x371   :  { %v1511_v8 = vcombine.low %v4561_v61, %v4565_v6  ;;  %v1483_v19 = vrot.slane %v4565_v6, 6  ;;  %v1466_v36 = vrot.slane %v4565_v6, 5  ;;  %v1499_v37 = vrot.slane %v4565_v6, 7  ;;  %v1596_v61 = vld [vmem:[%s5190_s2 + $0x130] sm:$0xff] }
 0x373   :  { %v1485_v26 = vrot.slane %v1483_v19, 4  ;;  %v1468_v33 = vrot.slane %v1466_v36, 4  ;;  %v1501_v34 = vrot.slane %v1499_v37, 4  ;;  %v1484_v20 = vsel %vm4585_vm8, %v2652_v57, %v1483_v19 }
 0x374   :  { %v1467_v2 = vsel %vm4597_vm9, %v2650_v59, %v1466_v36  ;;  %v1500_v14 = vsel %vm4607_vm10, %v2654_v7, %v1499_v37  ;;  %v1598_v7 = vld [vmem:[%s5190_s2 + $0x140] sm:$0xff] }
 0x379   :  { %v1345_v22 = vpop.f32.mrb[4].mxu1  ;;  %v1443_v23 = vpop.f32.mrb[16].mxu0 }
 0x37a   :  { %v4595_v29 = vmax.f32 %v1345_v22, %v1443_v23  ;;  %v1347_v30 = vpop.f32.mrb[5].mxu1  ;;  %v1445_v31 = vpop.f32.mrb[17].mxu0 }
 0x37b   :  { %v1593_v31 = vld [vmem:[%s5190_s2 + $0x118] sm:$0xff] }
 0x37c   :  { %v1486_v39 = vrot.slane %v4595_v29, 6  ;;  %v1469_v5 = vrot.slane %v4595_v29, 5  ;;  %v1502_v9 = vrot.slane %v4595_v29, 7  ;;  %v1539_v10 = vcombine.low %v4565_v6, %v4595_v29  ;;  %v1597_v6 = vld [vmem:[%s5190_s2 + $0x138] sm:$0xff] }
 0x37d   :  { %v4635_v17 = vcombine.high %v4595_v29, %v4595_v29  ;;  %v3295_v57 = vpack.c.bf16 %v1593_v31, %v1592_v24 }
 0x37e   :  { %v1487_v25 = vsel %vm4585_vm8, %v1485_v26, %v1486_v39  ;;  %v1470_v11 = vsel %vm4597_vm9, %v1468_v33, %v1469_v5  ;;  %v1503_v12 = vsel %vm4607_vm10, %v1501_v34, %v1502_v9  ;;  %v1595_v39 = vld [vmem:[%s5190_s2 + $0x128] sm:$0xff] }
 0x37f   :  { %v1523_v13 = vcombine.low %v1484_v20, %v1487_v25  ;;  %v1515_v41 = vcombine.low %v1467_v2, %v1470_v11  ;;  %v1531_v46 = vcombine.low %v1500_v14, %v1503_v12  ;;  %v2651_v49 = vrot.slane %v4635_v17, 9  ;;  %v1600_v20 = vld [vmem:[%s5190_s2 + $0x150] sm:$0xff]  ;;  %v1601_v2 = vld [vmem:[%s5190_s2 + $0x158] sm:$0xff] }
 0x380   :  { %v2653_v50 = vrot.slane %v4635_v17, 10  ;;  %v2655_v58 = vrot.slane %v4635_v17, 11  ;;  %v3299_v5 = vpack.c.bf16 %v1595_v39, %v1594_v35  ;;  %v3311_v11 = vpack.c.bf16 %v1601_v2, %v1600_v20 }
 0x381   :  { %1525 = vrot.lane.b32.xlu0 %v1523_v13, %s3585_s28  ;;  %1517 = vrot.lane.b32.xlu1 %v1515_v41, %s3586_s29 }
 0x385   :  { %1533 = vrot.lane.b32.xlu1 %v1531_v46, %s3587_s30 }
 0x38b   :  { %v1350_v44 = vpop.f32.mrb[6].mxu1  ;;  %v1448_v42 = vpop.f32.mrb[18].mxu0 }
 0x38c   :  { %v4637_v43 = vmax.f32 %v1350_v44, %v1448_v42  ;;  %v1352_v47 = vpop.f32.mrb[7].mxu1  ;;  %v1450_v48 = vpop.f32.mrb[19].mxu0  ;;  %v1602_v42 = vld [vmem:[%s5190_s2 + $0x160] sm:$0xff] }
 0x38e   :  { %v1460_v53 = vcombine.high %v4637_v43, %v4637_v43  ;;  %v1473_v15 = vrot.slane %v4637_v43, 5  ;;  %v1490_v55 = vrot.slane %v4637_v43, 6  ;;  %v1506_v56 = vrot.slane %v4637_v43, 7 }
 0x38f   :  { %v1512_v60 = vcombine.low %v4635_v17, %v4637_v43  ;;  %v1761_v17 = vld [vmem:[%s5190_s2 + $0x168] sm:$0xff] }
 0x390   :  { %v1474_v63 = vsel %vm4597_vm9, %v2651_v49, %v1473_v15  ;;  %v1475_v4 = vrot.slane %v1473_v15, 4  ;;  %v1476_v45 = vrot.slane %v1460_v53, 5  ;;  %v1491_v16 = vsel %vm4585_vm8, %v2653_v50, %v1490_v55  ;;  %v1763_v49 = vld [vmem:[%s5190_s2 + $0x178] sm:$0xff] }
 0x391   :  { %v1492_v18 = vrot.slane %v1490_v55, 4  ;;  %v1493_v19 = vrot.slane %v1460_v53, 6  ;;  %v1507_v62 = vsel %vm4607_vm10, %v2655_v58, %v1506_v56  ;;  %v1508_v21 = vrot.slane %v1506_v56, 4  ;;  %v1765_v55 = vld [vmem:[%s5190_s2 + $0x188] sm:$0xff]  ;;  %v1766_v56 = vld [vmem:[%s5190_s2 + $0x190] sm:$0xff] }
 0x392   :  { %v1477_v36 = vsel %vm4597_vm9, %v1475_v4, %v1476_v45  ;;  %v1509_v37 = vrot.slane %v1460_v53, 7  ;;  %v1540_v1 = vcombine.low %v4637_v43, %v1460_v53  ;;  %v1762_v43 = vld [vmem:[%s5190_s2 + $0x170] sm:$0xff]  ;;  %v1764_v53 = vld [vmem:[%s5190_s2 + $0x180] sm:$0xff]  ;;  %v3322_v58 = vpack.c.bf16 %v1766_v56, %v1765_v55  ;;  %v1769_v45 = vld [vmem:[%s5190_s2 + $0x1a8] sm:$0xff] }
 0x393   :  { %v1516_v3 = vcombine.low %v1474_v63, %v1477_v36  ;;  %v1494_v22 = vsel %vm4585_vm8, %v1492_v18, %v1493_v19  ;;  %v3316_v50 = vpack.c.bf16 %v1762_v43, %v1761_v17  ;;  %v3319_v15 = vpack.c.bf16 %v1764_v53, %v1763_v49  ;;  %v1768_v63 = vld [vmem:[%s5190_s2 + $0x1a0] sm:$0xff]  ;;  %v1771_v18 = vld [vmem:[%s5190_s2 + $0x1b8] sm:$0xff]  ;;  %v2170_v17 = vld [vmem:[%s5190_s2 + $0x270] sm:$0xff] }
 0x394   :  { %v1524_v23 = vcombine.low %v1491_v16, %v1494_v22  ;;  %v1510_v26 = vsel %vm4607_vm10, %v1508_v21, %v1509_v37  ;;  %v1770_v16 = vld [vmem:[%s5190_s2 + $0x1b0] sm:$0xff]  ;;  %v3590_v21 = vmov 0.0   ;;  %v1773_v37 = vld [vmem:[%s5190_s2 + $0x1c8] sm:$0xff]  ;;  %v2037_v43 = vld [vmem:[%s5190_s2 + $0x1f8] sm:$0xff] }
 0x395   :  { %1519 = vrot.lane.b32.xlu0 %v1516_v3, %s3586_s29  ;;  %v1532_v27 = vcombine.low %v1507_v62, %v1510_v26  ;;  %3317 = vmatpush3.bf16.msra.mxu0 %v3316_v50  ;;  %v3328_v19 = vpack.c.bf16 %v1770_v16, %v1769_v45  ;;  %v1772_v62 = vld [vmem:[%s5190_s2 + $0x1c0] sm:$0xff]  ;;  %v1774_v3 = vld [vmem:[%s5190_s2 + $0x1d0] sm:$0xff]  ;;  %v2171_v53 = vld [vmem:[%s5190_s2 + $0x278] sm:$0xff] }
 0x396   :  { %1527 = vrot.lane.b32.xlu1 %v1524_v23, %s3585_s28  ;;  %3318 = vmatprep.subr.bf16.mxu0 %v3582_v40  ;;  %v3331_v36 = vpack.c.bf16 %v1772_v62, %v1771_v18  ;;  %v3334_v22 = vpack.c.bf16 %v1774_v3, %v1773_v37  ;;  %v1775_v23 = vld [vmem:[%s5190_s2 + $0x1d8] sm:$0xff]  ;;  %v1776_v26 = vld [vmem:[%s5190_s2 + $0x1e0] sm:$0xff] }
 0x397   :  { %v2038_v49 = vld [vmem:[%s5190_s2 + $0x200] sm:$0xff]  ;;  %v2041_v18 = vld [vmem:[%s5190_s2 + $0x218] sm:$0xff] }
 0x398   :  { %v3367_v55 = vpack.c.bf16 %v2038_v49, %v2037_v43  ;;  %v2175_v62 = vld [vmem:[%s5190_s2 + $0x298] sm:$0xff] }
 0x399   :  { %1535 = vrot.lane.b32.xlu0 %v1532_v27, %s3587_s30  ;;  %3320 = vmatpush3.bf16.msra.mxu0 %v3319_v15  ;;  %v3337_v27 = vpack.c.bf16 %v1776_v26, %v1775_v23  ;;  %v2044_v23 = vld [vmem:[%s5190_s2 + $0x230] sm:$0xff]  ;;  %v2177_v26 = vld [vmem:[%s5190_s2 + $0x2a8] sm:$0xff] }
 0x39a   :  { %1541 = vrot.lane.b32.xlu1 %v1539_v10, %s3588_s9  ;;  %3321 = vmatprep.subr.bf16.mxu0 %v3582_v40 }
 0x39d   :  { %1543 = vrot.lane.b32.xlu0 %v1540_v1, %s3588_s9  ;;  %3323 = vmatpush3.bf16.msra.mxu0 %v3322_v58 }
 0x39e   :  { %3324 = vmatprep.subr.bf16.mxu0 %v3582_v40 }
 0x3f3   :  { %v1518_v29 = vpop.permute.xlu1 %1517  ;;  %v1526_v30 = vpop.permute.xlu0 %1525 }
 0x3f4   :  { %v1550_v32 = vsel %vm366_vm11, %v1518_v29, %v1526_v30  ;;  %v1548_v59 = vsel %vm1547_vm4, %v1511_v8, %v1518_v29  ;;  %v3303_v8 = vpack.c.bf16 %v1597_v6, %v1596_v61 }
 0x3f7   :  { %v1534_v33 = vpop.permute.xlu1 %1533 }
 0x3f8   :  { %v1553_v34 = vsel %vm1552_vm3, %v1550_v32, %v1534_v33 }
 0x3f9   :  { %1675 = vmatprep.mubr.f32.mxu1 %v1553_v34 }
 0x3fa   :  { %1676 = vmatmul.mubr.f32.vlgmr.msra.gmra.mrb[8].mxu1 %v1548_v59 }
 0x3fb   :  { %3294 = vmatpush3.bf16.msra.mxu1 %v4601_v38  ;;  %v1599_v38 = vld [vmem:[%s5190_s2 + $0x148] sm:$0xff] }
 0x3fc   :  { %3296 = vmatprep.subr.bf16.mxu1 %v3295_v57  ;;  %v3307_v9 = vpack.c.bf16 %v1599_v38, %v1598_v7 }
 0x3ff   :  { %3298 = vmatpush3.bf16.msra.mxu1 %v3295_v57 }
 0x400   :  { %3300 = vmatprep.subr.bf16.mxu1 %v3299_v5 }
 0x403   :  { %3302 = vmatpush3.bf16.msra.mxu1 %v3299_v5 }
 0x404   :  { %3304 = vmatprep.subr.bf16.mxu1 %v3303_v8 }
 0x407   :  { %v1520_v10 = vpop.permute.xlu0 %1519  ;;  %3306 = vmatpush3.bf16.msra.mxu1 %v3303_v8 }
 0x408   :  { %v1528_v25 = vpop.permute.xlu1 %1527  ;;  %3308 = vmatprep.subr.bf16.mxu1 %v3307_v9  ;;  %v1549_v44 = vsel %vm1547_vm4, %v1512_v60, %v1520_v10  ;;  %v1767_v60 = vld [vmem:[%s5190_s2 + $0x198] sm:$0xff] }
 0x409   :  { %v1551_v14 = vsel %vm366_vm11, %v1520_v10, %v1528_v25  ;;  %v3325_v4 = vpack.c.bf16 %v1768_v63, %v1767_v60  ;;  %vm3589_vm11 = vmmov 0   ;;  %v2040_v60 = vld [vmem:[%s5190_s2 + $0x210] sm:$0xff]  ;;  %v2173_v63 = vld [vmem:[%s5190_s2 + $0x288] sm:$0xff] }
 0x40a   :  { %2917 = vmatprep.mubr.msk.f32.mxu0 %vm3589_vm11, %v3590_v21 }
 0x40b   :  { %v1536_v12 = vpop.permute.xlu0 %1535  ;;  %3310 = vmatpush3.bf16.msra.mxu1 %v3307_v9  ;;  %3326 = vmatpush3.bf16.msra.mxu0 %v3325_v4 }
 0x40c   :  { %v1542_v13 = vpop.permute.xlu1 %1541  ;;  %v1554_v41 = vsel %vm1552_vm3, %v1551_v14, %v1536_v12  ;;  %3312 = vmatprep.subr.bf16.mxu1 %v3311_v11  ;;  %3327 = vmatprep.subr.bf16.mxu0 %v3582_v40 }
 0x40d   :  { %v1556_v46 = vsel %vm1555_vm5, %v1534_v33, %v1542_v13  ;;  %1680 = vmatprep.mubr.f32.mxu1 %v1554_v41  ;;  %v1603_v33 = vld [vmem:[%s5191_s3 + $0x3] ss:$0 sm:$0xff] }
 0x40e   :  { %1681 = vmatmul.mubr.f32.gmra.mrb[10].mxu1 %v1549_v44  ;;  %v2035_v44 = vld [vmem:[%s5190_s2 + $0x1e8] sm:$0xff] }
 0x40f   :  { %2882 = vmatprep.mubr.msk.f32.mxu1 %vm1604_vm6, %v1556_v46  ;;  %3314 = vmatpush3.bf16.msra.mxu1 %v3311_v11  ;;  %v1544_v47 = vpop.permute.xlu0 %1543 }
 0x410   :  { %2880 = vmatprep.subr.mxu1 %v1602_v42  ;;  %v1557_v48 = vsel %vm1555_vm5, %v1536_v12, %v1544_v47  ;;  %3329 = vmatpush3.bf16.msra.mxu0 %v3328_v19  ;;  %v2169_v47 = vld [vmem:[%s5190_s2 + $0x268] sm:$0xff] }
 0x411   :  { %3330 = vmatprep.subr.bf16.mxu0 %v3582_v40 }
 0x413   :  { %2881 = vmatpush3.msra.mxu1 %v1602_v42  ;;  %v2036_v42 = vld [vmem:[%s5190_s2 + $0x1f0] sm:$0xff] }
 0x414   :  { %2883 = vmatmul.mubr.msk.f32.vlgmr.msra.gmra.mrb[12].mxu1 %vm1604_vm6, %v1557_v48  ;;  %3339 = vmatprep.subr.bf16.mxu1 %v3582_v40  ;;  %v3364_v48 = vpack.c.bf16 %v2036_v42, %v2035_v44  ;;  %v1936_v42 = vld [vmem:[%s5191_s3 + $0x4] ss:$0 sm:$0xff] }
 0x415   :  { %3341 = vmatpush3.bf16.msra.mxu1 %v3316_v50  ;;  %2952 = vmatprep.mubr.msk.f32.mxu1 %vm3589_vm11, %v3590_v21  ;;  %v3388_v50 = vpack.c.bf16 %v2170_v17, %v2169_v47  ;;  %v1940_v17 = vld [vmem:[%s5191_s3 + $0x5] ss:$0 sm:$0xff] }
 0x416   :  { %3342 = vmatprep.subr.bf16.mxu1 %v3582_v40  ;;  %3332 = vmatpush3.bf16.msra.mxu0 %v3331_v36 }
 0x417   :  { %3333 = vmatprep.subr.bf16.mxu0 %v3582_v40 }
 0x419   :  { %3344 = vmatpush3.bf16.msra.mxu1 %v3319_v15  ;;  %v2172_v15 = vld [vmem:[%s5190_s2 + $0x280] sm:$0xff] }
 0x41a   :  { %3345 = vmatprep.subr.bf16.mxu1 %v3582_v40  ;;  %3335 = vmatpush3.bf16.msra.mxu0 %v3334_v22  ;;  %v3391_v56 = vpack.c.bf16 %v2172_v15, %v2171_v53 }
 0x41b   :  { %3336 = vmatprep.subr.bf16.mxu0 %v3582_v40 }
 0x41d   :  { %3347 = vmatpush3.bf16.msra.mxu1 %v3322_v58  ;;  %v2039_v58 = vld [vmem:[%s5190_s2 + $0x208] sm:$0xff] }
 0x41e   :  { %3348 = vmatprep.subr.bf16.mxu1 %v3582_v40  ;;  %3338 = vmatpush3.bf16.msra.mxu0 %v3337_v27  ;;  %v3370_v45 = vpack.c.bf16 %v2040_v60, %v2039_v58 }
 0x41f   :  { %3363 = vmatprep.subr.bf16.mxu0 %v3582_v40 }
 0x421   :  { %3350 = vmatpush3.bf16.msra.mxu1 %v3325_v4  ;;  %v2174_v4 = vld [vmem:[%s5190_s2 + $0x290] sm:$0xff] }
 0x422   :  { %3351 = vmatprep.subr.bf16.mxu1 %v3582_v40  ;;  %v3394_v16 = vpack.c.bf16 %v2174_v4, %v2173_v63 }
 0x425   :  { %3353 = vmatpush3.bf16.msra.mxu1 %v3328_v19  ;;  %v2042_v19 = vld [vmem:[%s5190_s2 + $0x220] sm:$0xff] }
 0x426   :  { %3354 = vmatprep.subr.bf16.mxu1 %v3582_v40  ;;  %v3373_v37 = vpack.c.bf16 %v2042_v19, %v2041_v18 }
 0x429   :  { %3356 = vmatpush3.bf16.msra.mxu1 %v3331_v36  ;;  %v2176_v36 = vld [vmem:[%s5190_s2 + $0x2a0] sm:$0xff] }
 0x42a   :  { %3357 = vmatprep.subr.bf16.mxu1 %v3582_v40  ;;  %v3397_v3 = vpack.c.bf16 %v2176_v36, %v2175_v62 }
 0x42d   :  { %3359 = vmatpush3.bf16.msra.mxu1 %v3334_v22  ;;  %v2043_v22 = vld [vmem:[%s5190_s2 + $0x228] sm:$0xff] }
 0x42e   :  { %3360 = vmatprep.subr.bf16.mxu1 %v3582_v40 }
 0x431   :  { %3362 = vmatpush3.bf16.msra.mxu1 %v3337_v27  ;;  %v2178_v27 = vld [vmem:[%s5190_s2 + $0x2b0] sm:$0xff] }
 0x432   :  { %3387 = vmatprep.subr.bf16.mxu1 %v3582_v40 }
 0x4cd   :  { %v2698_v1 = vpop.f32.mrb[8].mxu1 }
 0x4ce   :  { %v2699_v29 = vpop.f32.mrb[9].mxu1 }
 0x4cf   :  { %v2700_v30 = vadd.f32 %v2699_v29, %v2698_v1  ;;  %v3376_v1 = vpack.c.bf16 %v2044_v23, %v2043_v22  ;;  %v3400_v29 = vpack.c.bf16 %v2178_v27, %v2177_v26 }
 0x4d1   :  { %v1678_v59 = vadd.f32 %v2700_v30, %v1603_v33  ;;  %v2045_v30 = vld [vmem:[%s5190_s2 + $0x238] sm:$0xff] }
 0x4e1   :  { %v2701_v24 = vpop.f32.mrb[10].mxu1 }
 0x4e2   :  { %v2702_v31 = vpop.f32.mrb[11].mxu1 }
 0x4e3   :  { %v2703_v32 = vadd.f32 %v2702_v31, %v2701_v24  ;;  %v2046_v24 = vld [vmem:[%s5190_s2 + $0x240] sm:$0xff]  ;;  %v2179_v31 = vld [vmem:[%s5190_s2 + $0x2b8] sm:$0xff] }
 0x4e5   :  { %v1683_v34 = vadd.f32 %v2703_v32, %v1603_v33  ;;  %v2180_v32 = vld [vmem:[%s5190_s2 + $0x2c0] sm:$0xff]  ;;  %v3379_v33 = vpack.c.bf16 %v2046_v24, %v2045_v30 }
 0x4e7   :  { %v2884_v57 = vpop.f32.mrb[12].mxu1 }
 0x4e8   :  { %v4785_v35 = vadd.f32 %v2884_v57, %v1683_v34  ;;  %v1752_v39 = vpop.f32.mrb[13].mxu1  ;;  %v3403_v34 = vpack.c.bf16 %v2180_v32, %v2179_v31  ;;  %v2047_v57 = vld [vmem:[%s5190_s2 + $0x248] sm:$0xff] }
 0x4e9   :  { %v4787_v5 = vadd.f32 %v1752_v39, %v1678_v59  ;;  %v2048_v59 = vld [vmem:[%s5190_s2 + $0x250] sm:$0xff]  ;;  %v2181_v39 = vld [vmem:[%s5190_s2 + $0x2c8] sm:$0xff] }
 0x4ea   :  { %v1785_v61 = vmul.f32 %v4785_v35, %v4785_v35 }
 0x4eb   :  { %v1777_v6 = vadd.f32 %v4785_v35, %v4787_v5  ;;  %v1784_v8 = vmul.f32 %v4787_v5, %v4787_v5 }
 0x4ed   :  { %v1778_v7 = vrot.slane %v1777_v6, 4  ;;  %v1786_v38 = vadd.f32 %v1785_v61, %v1784_v8  ;;  %v2182_v61 = vld [vmem:[%s5190_s2 + $0x2d0] sm:$0xff] }
 0x4ee   :  { %v3406_v8 = vpack.c.bf16 %v2182_v61, %v2181_v39 }
 0x4ef   :  { %v1779_v9 = vadd.f32 %v1778_v7, %v1777_v6  ;;  %v1787_v20 = vrot.slane %v1786_v38, 4  ;;  %v3382_v6 = vpack.c.bf16 %v2048_v59, %v2047_v57  ;;  %v2049_v7 = vld [vmem:[%s5190_s2 + $0x258] sm:$0xff] }
 0x4f1   :  { %v1780_v2 = vrot.slane %v1779_v9, 2  ;;  %v1788_v10 = vadd.f32 %v1787_v20, %v1786_v38  ;;  %v2050_v38 = vld [vmem:[%s5190_s2 + $0x260] sm:$0xff] }
 0x4f2   :  { %v2184_v20 = vld [vmem:[%s5190_s2 + $0x2e0] sm:$0xff] }
 0x4f3   :  { %v1781_v25 = vadd.f32 %v1780_v2, %v1779_v9  ;;  %v1789_v11 = vrot.slane %v1788_v10, 2  ;;  %v2183_v9 = vld [vmem:[%s5190_s2 + $0x2d8] sm:$0xff]  ;;  %v3385_v2 = vpack.c.bf16 %v2050_v38, %v2049_v7 }
 0x4f5   :  { %v1782_v14 = vrot.slane %v1781_v25, 1  ;;  %v1790_v12 = vadd.f32 %v1789_v11, %v1788_v10  ;;  %v3409_v10 = vpack.c.bf16 %v2184_v20, %v2183_v9 }
 0x4f7   :  { %v1783_v13 = vadd.f32 %v1782_v14, %v1781_v25  ;;  %v1791_v41 = vrot.slane %v1790_v12, 1 }
 0x4f9   :  { %2918 = vmatmul.mubr.f32.vlgmr.msra.gmra.mrb[20].mxu0 %v1783_v13  ;;  %v1792_v46 = vadd.f32 %v1791_v41, %v1790_v12 }
 0x4fa   :  { %2987 = vmatprep.mubr.msk.f32.mxu0 %vm3589_vm11, %v3590_v21  ;;  %3365 = vmatpush3.bf16.msra.mxu0 %v3364_v48 }
 0x4fb   :  { %2953 = vmatmul.mubr.f32.vlgmr.msra.gmra.mrb[14].mxu1 %v1792_v46  ;;  %3366 = vmatprep.subr.bf16.mxu0 %v3582_v40 }
 0x4fc   :  { %3022 = vmatprep.mubr.msk.f32.mxu1 %vm3589_vm11, %v3590_v21  ;;  %3389 = vmatpush3.bf16.msra.mxu1 %v3388_v50 }
 0x4fd   :  { %3390 = vmatprep.subr.bf16.mxu1 %v3582_v40 }
 0x4fe   :  { %3368 = vmatpush3.bf16.msra.mxu0 %v3367_v55 }
 0x4ff   :  { %3369 = vmatprep.subr.bf16.mxu0 %v3582_v40 }
 0x500   :  { %3392 = vmatpush3.bf16.msra.mxu1 %v3391_v56 }
 0x501   :  { %3393 = vmatprep.subr.bf16.mxu1 %v3582_v40 }
 0x502   :  { %3371 = vmatpush3.bf16.msra.mxu0 %v3370_v45 }
 0x503   :  { %3372 = vmatprep.subr.bf16.mxu0 %v3582_v40 }
 0x504   :  { %3395 = vmatpush3.bf16.msra.mxu1 %v3394_v16 }
 0x505   :  { %3396 = vmatprep.subr.bf16.mxu1 %v3582_v40 }
 0x506   :  { %3374 = vmatpush3.bf16.msra.mxu0 %v3373_v37 }
 0x507   :  { %3375 = vmatprep.subr.bf16.mxu0 %v3582_v40 }
 0x508   :  { %3398 = vmatpush3.bf16.msra.mxu1 %v3397_v3 }
 0x509   :  { %3399 = vmatprep.subr.bf16.mxu1 %v3582_v40 }
 0x50a   :  { %3377 = vmatpush3.bf16.msra.mxu0 %v3376_v1 }
 0x50b   :  { %3378 = vmatprep.subr.bf16.mxu0 %v3582_v40 }
 0x50c   :  { %3401 = vmatpush3.bf16.msra.mxu1 %v3400_v29 }
 0x50d   :  { %3402 = vmatprep.subr.bf16.mxu1 %v3582_v40 }
 0x50e   :  { %3380 = vmatpush3.bf16.msra.mxu0 %v3379_v33 }
 0x50f   :  { %3381 = vmatprep.subr.bf16.mxu0 %v3582_v40 }
 0x510   :  { %3404 = vmatpush3.bf16.msra.mxu1 %v3403_v34 }
 0x511   :  { %3405 = vmatprep.subr.bf16.mxu1 %v3582_v40 }
 0x512   :  { %3383 = vmatpush3.bf16.msra.mxu0 %v3382_v6 }
 0x513   :  { %3384 = vmatprep.subr.bf16.mxu0 %v3582_v40 }
 0x514   :  { %3407 = vmatpush3.bf16.msra.mxu1 %v3406_v8 }
 0x515   :  { %3408 = vmatprep.subr.bf16.mxu1 %v3582_v40 }
 0x516   :  { %3386 = vmatpush3.bf16.msra.mxu0 %v3385_v2 }
 0x518   :  { %3410 = vmatpush3.bf16.msra.mxu1 %v3409_v10 }
 0x519   :  { %3443 = vmatprep.subr.bf16.mxu1 %v3582_v40 }
 0x5cc   :  { %v1859_v25 = vpop.f32.mrb[20].mxu0 }
 0x5cd   :  { %v1933_v11 = vmul.f32 %v1859_v25, %v1859_v25  ;;  %v2919_v14 = vpop.f32.mrb[21].mxu0 }
 0x5ce   :  { %v1929_v12 = vpop.f32.mrb[14].mxu1 }
 0x5cf   :  { %v1934_v13 = vsub.f32 %v1929_v12, %v1933_v11  ;;  %v2954_v41 = vpop.f32.mrb[15].mxu1 }
 0x5d0   :  { %v2321_v41 = vld [vmem:[%s5190_s2 + $0x368] sm:$0xff] }
 0x5d1   :  { %v1935_v46 = vmax.f32 %v1934_v13, 0.0 }
 0x5d3   :  { %v1937_v44 = vadd.f32 1e-05, %v1935_v46  ;;  %v2322_v46 = vld [vmem:[%s5190_s2 + $0x370] sm:$0xff] }
 0x5d5   :  { %3551 = vrsqrt.f32 %v1937_v44  ;;  %v2305_v44 = vld [vmem:[%s5190_s2 + $0x2e8] sm:$0xff] }
 0x5df   :  { %v3552_v47 = vpop.eup %3551 }
 0x5e0   :  { %v1939_v48 = vmul.f32 %v3552_v47, %v1936_v42  ;;  %v3411_v42 = vpack.c.bf16 %v2322_v46, %v2321_v41  ;;  %v2306_v47 = vld [vmem:[%s5190_s2 + $0x2f0] sm:$0xff] }
 0x5e2   :  { %v1941_v43 = vmul.f32 %v1939_v48, %v1859_v25  ;;  %v1946_v49 = vrot.slane %v1939_v48, %v4001_v52  ;;  %v2323_v48 = vld [vmem:[%s5190_s2 + $0x378] sm:$0xff]  ;;  %3412 = vmatprep.subr.bf16.mxu0 %v3411_v42 }
 0x5e4   :  { %v1942_v50 = vsub.f32 %v1940_v17, %v1941_v43  ;;  %v1947_v53 = vmul.f32 %v1946_v49, %v4787_v5  ;;  %v1948_v15 = vmul.f32 %v1946_v49, %v4785_v35  ;;  %v2324_v17 = vld [vmem:[%s5190_s2 + $0x380] sm:$0xff]  ;;  %v3413_v43 = vpack.c.bf16 %v2306_v47, %v2305_v44 }
 0x5e5   :  { %v3415_v49 = vpack.c.bf16 %v2324_v17, %v2323_v48 }
 0x5e6   :  { %v1952_v55 = vrot.slane %v1942_v50, %v4001_v52  ;;  %v2307_v50 = vld [vmem:[%s5190_s2 + $0x2f8] sm:$0xff] }
 0x5e8   :  { %v1953_v56 = vadd.f32 %v1952_v55, %v1947_v53  ;;  %v1954_v58 = vadd.f32 %v1952_v55, %v1948_v15  ;;  %v2308_v53 = vld [vmem:[%s5190_s2 + $0x300] sm:$0xff]  ;;  %v2325_v15 = vld [vmem:[%s5190_s2 + $0x388] sm:$0xff]  ;;  %v2326_v55 = vld [vmem:[%s5190_s2 + $0x390] sm:$0xff] }
 0x5ea   :  { %1955 = vst [vmem:[%s5193_s5] sm:$0xff] %v1953_v56  ;;  %1956 = vst [vmem:[%s5193_s5 + $0x8] sm:$0xff] %v1954_v58  ;;  %v1957_v60 = vmax.f32 %v1953_v56, 0.0  ;;  %v1958_v63 = vmax.f32 %v1954_v58, 0.0  ;;  %v3417_v56 = vpack.c.bf16 %v2308_v53, %v2307_v50  ;;  %v3419_v58 = vpack.c.bf16 %v2326_v55, %v2325_v15  ;;  %v2413_v53 = vld [vmem:[%s5190_s2 + $0x408] sm:$0xff]  ;;  %v2414_v15 = vld [vmem:[%s5190_s2 + $0x410] sm:$0xff] }
 0x5ec   :  { %v1961_v4 = vcombine.high %v1957_v60, %v1957_v60  ;;  %v1968_v45 = vrot.slane %v1957_v60, %v4295_v0  ;;  %v1978_v5 = vcombine.high %v1958_v63, %v1958_v63  ;;  %v1985_v35 = vrot.slane %v1958_v63, %v4295_v0  ;;  %v2309_v60 = vld [vmem:[%s5190_s2 + $0x308] sm:$0xff]  ;;  %v2310_v63 = vld [vmem:[%s5190_s2 + $0x310] sm:$0xff] }
 0x5ee   :  { %v1975_v16 = vrot.slane %v1961_v4, %v4295_v0  ;;  %v1976_v18 = vcombine.high %v1968_v45, %v1968_v45  ;;  %v1992_v19 = vrot.slane %v1978_v5, %v4295_v0  ;;  %v1993_v62 = vcombine.high %v1985_v35, %v1985_v35  ;;  %v2327_v4 = vld [vmem:[%s5190_s2 + $0x398] sm:$0xff] }
 0x5ef   :  { %v2658_v36 = vrot.slane %v1968_v45, 9  ;;  %v2662_v37 = vrot.slane %v1985_v35, 9  ;;  %v3421_v5 = vpack.c.bf16 %v2310_v63, %v2309_v60  ;;  %v2415_v60 = vld [vmem:[%s5190_s2 + $0x418] sm:$0xff]  ;;  %v2416_v63 = vld [vmem:[%s5190_s2 + $0x420] sm:$0xff] }
 0x5f0   :  { %v1977_v3 = vcombine.high %v1975_v16, %v1975_v16  ;;  %v1994_v22 = vcombine.high %v1992_v19, %v1992_v19  ;;  %v2659_v23 = vrot.slane %v1976_v18, 9  ;;  %v2660_v26 = vrot.slane %v1975_v16, 9 }
 0x5f1   :  { %v2663_v27 = vrot.slane %v1993_v62, 9  ;;  %v2664_v1 = vrot.slane %v1992_v19, 9  ;;  %v2027_v29 = vmax.f32 %v1968_v45, %v2658_v36  ;;  %v2031_v33 = vmax.f32 %v1985_v35, %v2662_v37  ;;  %v2328_v45 = vld [vmem:[%s5190_s2 + $0x3a0] sm:$0xff] }
 0x5f2   :  { %v2661_v30 = vrot.slane %v1977_v3, 9  ;;  %v2665_v24 = vrot.slane %v1994_v22, 9  ;;  %v2028_v31 = vmax.f32 %v1976_v18, %v2659_v23  ;;  %v2029_v32 = vmax.f32 %v1975_v16, %v2660_v26  ;;  %v2311_v16 = vld [vmem:[%s5190_s2 + $0x318] sm:$0xff]  ;;  %v2312_v18 = vld [vmem:[%s5190_s2 + $0x320] sm:$0xff] }
 0x5f3   :  { %v2032_v34 = vmax.f32 %v1993_v62, %v2663_v27  ;;  %v2062_v59 = vrot.slane %v2027_v29, %v4001_v52  ;;  %v2033_v61 = vmax.f32 %v1992_v19, %v2664_v1  ;;  %v2078_v38 = vrot.slane %v2031_v33, %v4001_v52  ;;  %v2329_v19 = vld [vmem:[%s5190_s2 + $0x3a8] sm:$0xff]  ;;  %v2330_v62 = vld [vmem:[%s5190_s2 + $0x3b0] sm:$0xff]  ;;  %v2331_v23 = vld [vmem:[%s5190_s2 + $0x3b8] sm:$0xff] }
 0x5f4   :  { %v2030_v57 = vmax.f32 %v1977_v3, %v2661_v30  ;;  %v2066_v0 = vrot.slane %v2028_v31, %v4001_v52  ;;  %v2070_v39 = vrot.slane %v2029_v32, %v4001_v52  ;;  %v2034_v6 = vmax.f32 %v1994_v22, %v2665_v24  ;;  %v2313_v3 = vld [vmem:[%s5190_s2 + $0x328] sm:$0xff]  ;;  %v2314_v22 = vld [vmem:[%s5190_s2 + $0x330] sm:$0xff]  ;;  %v2332_v26 = vld [vmem:[%s5190_s2 + $0x3c0] sm:$0xff] }
 0x5f5   :  { %v2082_v20 = vrot.slane %v2032_v34, %v4001_v52  ;;  %v2086_v10 = vrot.slane %v2033_v61, %v4001_v52  ;;  %v3423_v35 = vpack.c.bf16 %v2328_v45, %v2327_v4  ;;  %v3425_v36 = vpack.c.bf16 %v2312_v18, %v2311_v16  ;;  %v2315_v29 = vld [vmem:[%s5190_s2 + $0x338] sm:$0xff]  ;;  %v2316_v30 = vld [vmem:[%s5190_s2 + $0x340] sm:$0xff]  ;;  %v2333_v24 = vld [vmem:[%s5190_s2 + $0x3c8] sm:$0xff] }
 0x5f6   :  { %v2074_v8 = vrot.slane %v2030_v57, %v4001_v52  ;;  %v2091_v7 = vsel %vm1216_vm12, %v2066_v0, %v2062_v59  ;;  %v2090_v11 = vrot.slane %v2034_v6, %v4001_v52  ;;  %v3427_v37 = vpack.c.bf16 %v2330_v62, %v2329_v19  ;;  %v2334_v31 = vld [vmem:[%s5190_s2 + $0x3d0] sm:$0xff]  ;;  %v2317_v34 = vld [vmem:[%s5190_s2 + $0x348] sm:$0xff]  ;;  %v2335_v0 = vld [vmem:[%s5190_s2 + $0x3d8] sm:$0xff] }
 0x5f7   :  { %v2092_v9 = vsel %vm1218_vm13, %v2070_v39, %v2091_v7  ;;  %v3429_v27 = vpack.c.bf16 %v2314_v22, %v2313_v3  ;;  %v3431_v1 = vpack.c.bf16 %v2332_v26, %v2331_v23  ;;  %v3433_v32 = vpack.c.bf16 %v2316_v30, %v2315_v29  ;;  %v2318_v57 = vld [vmem:[%s5190_s2 + $0x350] sm:$0xff]  ;;  %v2336_v39 = vld [vmem:[%s5190_s2 + $0x3e0] sm:$0xff]  ;;  %v2319_v61 = vld [vmem:[%s5190_s2 + $0x358] sm:$0xff] }
 0x5f8   :  { %v2093_v2 = vsel %vm1220_vm14, %v2074_v8, %v2092_v9  ;;  %v3435_v33 = vpack.c.bf16 %v2334_v31, %v2333_v24  ;;  %v3437_v59 = vpack.c.bf16 %v2318_v57, %v2317_v34  ;;  %v3439_v6 = vpack.c.bf16 %v2336_v39, %v2335_v0  ;;  %v2320_v8 = vld [vmem:[%s5190_s2 + $0x360] sm:$0xff]  ;;  %v2417_v45 = vld [vmem:[%s5190_s2 + $0x428] sm:$0xff]  ;;  %v2419_v16 = vld [vmem:[%s5190_s2 + $0x438] sm:$0xff] }
 0x5f9   :  { %v2094_v25 = vsel %vm1222_vm15, %v2078_v38, %v2093_v2  ;;  %v3441_v7 = vpack.c.bf16 %v2320_v8, %v2319_v61  ;;  %v3453_v4 = vpack.c.bf16 %v2416_v63, %v2415_v60  ;;  %v2420_v18 = vld [vmem:[%s5190_s2 + $0x440] sm:$0xff]  ;;  %v2421_v23 = vld [vmem:[%s5190_s2 + $0x448] sm:$0xff]  ;;  %v2422_v26 = vld [vmem:[%s5190_s2 + $0x450] sm:$0xff] }
 0x5fa   :  { %v2095_v14 = vsel %vm1224_vm0, %v2082_v20, %v2094_v25  ;;  %v2292_v20 = vsub.s32 3, %v3998_v51  ;;  %v2412_v51 = vld [vmem:[%s5190_s2 + $0x400] sm:$0xff]  ;;  %v3459_v19 = vpack.c.bf16 %v2420_v18, %v2419_v16  ;;  %v2498_v30 = vld [vmem:[%s5190_s2 + $0x470] sm:$0xff]  ;;  %v2499_v24 = vld [vmem:[%s5190_s2 + $0x478] sm:$0xff] }
 0x5fb   :  { %v2096_v12 = vsel %vm1226_vm1, %v2086_v10, %v2095_v14  ;;  %v2410_v14 = vld [vmem:[%s5190_s2 + $0x3f0] sm:$0xff]  ;;  %v2424_v29 = vld [vmem:[%s5190_s2 + $0x460] sm:$0xff]  ;;  %v2501_v57 = vld [vmem:[%s5190_s2 + $0x488] sm:$0xff] }
 0x5fc   :  { %v2097_v13 = vsel %vm1228_vm2, %v2090_v11, %v2096_v12  ;;  %v2409_v11 = vld [vmem:[%s5190_s2 + $0x3e8] sm:$0xff]  ;;  %v2411_v12 = vld [vmem:[%s5190_s2 + $0x3f8] sm:$0xff]  ;;  %v2504_v61 = vld [vmem:[%s5190_s2 + $0x4a0] sm:$0xff] }
 0x5fd   :  { %2988 = vmatmul.mubr.f32.vlgmr.msra.gmra.mrb[22].mxu0 %v2097_v13  ;;  %3023 = vmatmul.mubr.f32.vlgmr.msra.gmra.mrb[16].mxu1 %v2097_v13  ;;  %v3444_v13 = vpack.c.bf16 %v2410_v14, %v2409_v11  ;;  %v3447_v48 = vpack.c.bf16 %v2412_v51, %v2411_v12  ;;  %v2503_v39 = vld [vmem:[%s5190_s2 + $0x498] sm:$0xff]  ;;  %v2505_v8 = vld [vmem:[%s5190_s2 + $0x4a8] sm:$0xff]  ;;  %v2337_v12 = vld [vmem:[%s5191_s3 + $0x6] ss:$0 sm:$0xff] }
 0x5fe   :  { %3057 = vmatprep.mubr.msk.f32.mxu1 %vm3589_vm11, %v3590_v21  ;;  %3414 = vmatpush3.bf16.msra.mxu0 %v3413_v43 }
 0x5ff   :  { %3416 = vmatprep.subr.bf16.mxu0 %v3415_v49  ;;  %3445 = vmatpush3.bf16.msra.mxu1 %v3444_v13 }
 0x600   :  { %3446 = vmatprep.subr.bf16.mxu1 %v3582_v40 }
 0x602   :  { %3418 = vmatpush3.bf16.msra.mxu0 %v3417_v56 }
 0x603   :  { %3420 = vmatprep.subr.bf16.mxu0 %v3419_v58  ;;  %3448 = vmatpush3.bf16.msra.mxu1 %v3447_v48 }
 0x604   :  { %3449 = vmatprep.subr.bf16.mxu1 %v3582_v40 }
 0x606   :  { %3422 = vmatpush3.bf16.msra.mxu0 %v3421_v5  ;;  %v2418_v5 = vld [vmem:[%s5190_s2 + $0x430] sm:$0xff] }
 0x607   :  { %3424 = vmatprep.subr.bf16.mxu0 %v3423_v35  ;;  %v3456_v35 = vpack.c.bf16 %v2418_v5, %v2417_v45 }
 0x60a   :  { %3426 = vmatpush3.bf16.msra.mxu0 %v3425_v36 }
 0x60b   :  { %3428 = vmatprep.subr.bf16.mxu0 %v3427_v37 }
 0x60e   :  { %3430 = vmatpush3.bf16.msra.mxu0 %v3429_v27  ;;  %v2423_v27 = vld [vmem:[%s5190_s2 + $0x458] sm:$0xff] }
 0x60f   :  { %3432 = vmatprep.subr.bf16.mxu0 %v3431_v1  ;;  %v3462_v1 = vpack.c.bf16 %v2422_v26, %v2421_v23  ;;  %v3465_v31 = vpack.c.bf16 %v2424_v29, %v2423_v27 }
 0x612   :  { %3434 = vmatpush3.bf16.msra.mxu0 %v3433_v32 }
 0x613   :  { %3436 = vmatprep.subr.bf16.mxu0 %v3435_v33  ;;  %v2500_v33 = vld [vmem:[%s5190_s2 + $0x480] sm:$0xff] }
 0x614   :  { %v3471_v34 = vpack.c.bf16 %v2500_v33, %v2499_v24 }
 0x616   :  { %3438 = vmatpush3.bf16.msra.mxu0 %v3437_v59  ;;  %v2502_v59 = vld [vmem:[%s5190_s2 + $0x490] sm:$0xff] }
 0x617   :  { %3440 = vmatprep.subr.bf16.mxu0 %v3439_v6  ;;  %v3474_v0 = vpack.c.bf16 %v2502_v59, %v2501_v57  ;;  %v3477_v6 = vpack.c.bf16 %v2504_v61, %v2503_v39 }
 0x61a   :  { %3442 = vmatpush3.bf16.msra.mxu0 %v3441_v7  ;;  %v2506_v7 = vld [vmem:[%s5190_s2 + $0x4b0] sm:$0xff] }
 0x61b   :  { %3467 = vmatprep.subr.bf16.mxu0 %v3582_v40 }
 0x6d0   :  { %v2165_v38 = vpop.f32.mrb[22].mxu0  ;;  %v2251_v9 = vpop.f32.mrb[16].mxu1 }
 0x6d1   :  { %v2255_v2 = vmax.f32 %v2165_v38, %v2251_v9  ;;  %v2989_v10 = vpop.f32.mrb[23].mxu0  ;;  %v3024_v25 = vpop.f32.mrb[17].mxu1  ;;  %v3480_v38 = vpack.c.bf16 %v2506_v7, %v2505_v8  ;;  %v2507_v9 = vld [vmem:[%s5190_s2 + $0x4b8] sm:$0xff] }
 0x6d2   :  { %v2509_v10 = vld [vmem:[%s5190_s2 + $0x4c8] sm:$0xff]  ;;  %v2510_v25 = vld [vmem:[%s5190_s2 + $0x4d0] sm:$0xff] }
 0x6d3   :  { %v2257_v41 = vcombine.high %v2255_v2, %v2255_v2  ;;  %v2271_v46 = vrot.slane %v2255_v2, %v4007_v54  ;;  %v2293_v44 = vrot.slane %v2255_v2, %v2292_v20  ;;  %v2283_v42 = vrot.slane %v2255_v2, %v4298_v28 }
 0x6d4   :  { %v2261_v47 = vrot.slane %v2255_v2, %v4001_v52  ;;  %v3486_v11 = vpack.c.bf16 %v2510_v25, %v2509_v10 }
 0x6d5   :  { %v2275_v17 = vrot.slane %v2257_v41, %v4007_v54  ;;  %v2297_v43 = vrot.slane %v2257_v41, %v2292_v20  ;;  %v2287_v49 = vrot.slane %v2257_v41, %v4298_v28  ;;  %v2265_v50 = vrot.slane %v2257_v41, %v4001_v52  ;;  %v2508_v20 = vld [vmem:[%s5190_s2 + $0x4c0] sm:$0xff] }
 0x6d6   :  { %v3450_v52 = vpack.c.bf16 %v2414_v15, %v2413_v53  ;;  %v3483_v2 = vpack.c.bf16 %v2508_v20, %v2507_v9 }
 0x6d7   :  { %v2276_v55 = vsel %vm1216_vm12, %v2275_v17, %v2271_v46  ;;  %v2298_v56 = vsel %vm1216_vm12, %v2297_v43, %v2293_v44  ;;  %v2288_v54 = vsel %vm1216_vm12, %v2287_v49, %v2283_v42  ;;  %v2266_v28 = vsel %vm1216_vm12, %v2265_v50, %v2261_v47  ;;  %v2511_v44 = vld [vmem:[%s5190_s2 + $0x4d8] sm:$0xff]  ;;  %v2512_v42 = vld [vmem:[%s5190_s2 + $0x4e0] sm:$0xff]  ;;  %v2513_v50 = vld [vmem:[%s5191_s3 + $0x10] ss:$0 sm:$0xff] }
 0x6d8   :  { %v3542_v58 = vpack.i.bf16 %v2276_v55, %v2298_v56  ;;  %3451 = vmatpush3.bf16.msra.mxu1 %v3450_v52  ;;  %vm2302_vm12 = vcmask 523264   ;;  %v3489_v47 = vpack.c.bf16 %v2512_v42, %v2511_v44 }
 0x6d9   :  { %3452 = vmatprep.subr.bf16.mxu1 %v3582_v40 }
 0x6da   :  { %3543 = vrot.lane.b32.xlu1 %v3542_v58, %s3591_s22  ;;  %s2596_s22 = sshll.u32 %s3592_s21, 4  ;;  %s2597_s22 = int_to_ptr.vmem [resolvable:$true] %s2596_s22 }
 0x6db   :  { %p3558_p1 = scmp.lt.s32.totalorder %s2597_s22, %s2597_s22 }
 0x6dc   :  { %3454 = vmatpush3.bf16.msra.mxu1 %v3453_v4 }
 0x6dd   :  { %3455 = vmatprep.subr.bf16.mxu1 %v3582_v40 }
 0x6e0   :  { %3457 = vmatpush3.bf16.msra.mxu1 %v3456_v35 }
 0x6e1   :  { %3458 = vmatprep.subr.bf16.mxu1 %v3582_v40 }
 0x6e4   :  { %3460 = vmatpush3.bf16.msra.mxu1 %v3459_v19 }
 0x6e5   :  { %3461 = vmatprep.subr.bf16.mxu1 %v3582_v40 }
 0x6e8   :  { %3463 = vmatpush3.bf16.msra.mxu1 %v3462_v1 }
 0x6e9   :  { %3464 = vmatprep.subr.bf16.mxu1 %v3582_v40 }
 0x6ec   :  { %3466 = vmatpush3.bf16.msra.mxu1 %v3465_v31 }
 0x74c   :  { %v3544_v62 = vpop.permute.xlu1 %3543 }
 0x74d   :  { %v3546_v36 = vunpack.i.h.bf16 %v3544_v62  ;;  %v3545_v37 = vunpack.i.l.bf16 %v3544_v62 }
 0x74f   :  { %v2304_v3 = vsel %vm2302_vm12, %v2288_v54, %v3545_v37  ;;  %v2303_v22 = vsel %vm2302_vm12, %v2266_v28, %v3546_v36 }
 0x750   :  { %2402 = vmatprep.mubr.f32.mxu0 %v2304_v3 }
 0x751   :  { %2403 = vmatmul.mubr.f32.vlgmr.msra.gmra.mrb[24].mxu0 %v2303_v22 }
 0x752   :  { %3092 = vmatprep.mubr.msk.f32.mxu0 %vm3589_vm11, %v3590_v21  ;;  %v2497_v21 = vld [vmem:[%s5190_s2 + $0x468] sm:$0xff]  ;;  %s3553_s2 = scalar_lea.vmem %s2597_s22, 32 }
 0x753   :  { %v3468_v32 = vpack.c.bf16 %v2498_v30, %v2497_v21  ;;  %p3554_p0 = scmp.ne.s32.totalorder %s2597_s22, %s3553_s2  ;;  %p3559_p2 = scmp.lt.s32.totalorder %s3553_s2, %s3553_s2 }
 0x755   :  { %3469 = vmatpush3.bf16.msra.mxu0 %v3468_v32  ;;  %p3560_p3 = por %p3559_p2, %p3558_p1 }
 0x756   :  { %3470 = vmatprep.subr.bf16.mxu0 %v3582_v40 }
 0x757   :  { %p3561_p4 = pnand %p3560_p3, %p3554_p0 }
 0x759   :  { %3472 = vmatpush3.bf16.msra.mxu0 %v3471_v34 }
 0x75a   :  { %3473 = vmatprep.subr.bf16.mxu0 %v3582_v40 }
 0x75d   :  { %3475 = vmatpush3.bf16.msra.mxu0 %v3474_v0 }
 0x75e   :  { %3476 = vmatprep.subr.bf16.mxu0 %v3582_v40 }
 0x761   :  { %3478 = vmatpush3.bf16.msra.mxu0 %v3477_v6 }
 0x762   :  { %3479 = vmatprep.subr.bf16.mxu0 %v3582_v40 }
 0x765   :  { %3481 = vmatpush3.bf16.msra.mxu0 %v3480_v38 }
 0x766   :  { %3482 = vmatprep.subr.bf16.mxu0 %v3582_v40 }
 0x769   :  { %3484 = vmatpush3.bf16.msra.mxu0 %v3483_v2 }
 0x76a   :  { %3485 = vmatprep.subr.bf16.mxu0 %v3582_v40 }
 0x76d   :  { %3487 = vmatpush3.bf16.msra.mxu0 %v3486_v11 }
 0x76e   :  { %3488 = vmatprep.subr.bf16.mxu0 %v3582_v40  ;;  %v2425_v40 = vld [vmem:[%s5191_s3 + $0x7] ss:$0 sm:$0xff] }
 0x771   :  { %3490 = vmatpush3.bf16.msra.mxu0 %v3489_v47 }
 0x824   :  { %v2819_v14 = vpop.f32.mrb[24].mxu0 }
 0x825   :  { %v2820_v13 = vpop.f32.mrb[25].mxu0 }
 0x826   :  { %v2821_v51 = vadd.f32 %v2820_v13, %v2819_v14 }
 0x828   :  { %v2405_v41 = vadd.f32 %v2821_v51, %v2337_v12 }
 0x82a   :  { %v2408_v46 = vmax.f32 %v2405_v41, 0.0 }
 0x82c   :  { %3058 = vmatmul.mubr.f32.vlgmr.msra.gmra.mrb[18].mxu1 %v2408_v46 }
 0x8ff   :  { %v2492_v48 = vpop.f32.mrb[18].mxu1 }
 0x900   :  { %v2493_v17 = vadd.f32 %v2492_v48, %v2425_v40  ;;  %v3059_v43 = vpop.f32.mrb[19].mxu1 }
 0x902   :  { %v2496_v49 = vmax.f32 %v2493_v17, 0.0 }
 0x904   :  { %3093 = vmatmul.mubr.f32.vlgmr.msra.gmra.mrb[26].mxu0 %v2496_v49 }
 0x9d7   :  { %v2580_v53 = vpop.f32.mrb[26].mxu0 }
 0x9d8   :  { %v2581_v15 = vadd.f32 %v2580_v53, %v2513_v50  ;;  %v3094_v55 = vpop.f32.mrb[27].mxu0 }
 0x9da   :  { %v2584_v56 = vmax.f32 %v2581_v15, 0.0 }
 0x9dc   :  { %2585 = vst [vmem:[#allocation2] sm:$0x3] %v2584_v56 }
 0x9dd   :  { %3564 = shalt.err (!%p3561_p4)
}
 0x9de   :  { %s3565_s0 = scalar_lea.hbm %s5194_s6, 32 }
 0x9df   :  { %p3566_p5 = scmp.ne.s32.totalorder %s5194_s6, %s3565_s0  ;;  %p3569_p6 = scmp.lt.u32.totalorder %s3565_s0, %s5194_s6 }
 0x9e1   :  { %p3571_p7 = pnand %p3569_p6, %p3566_p5 }
 0x9e3   :  { %3574 = shalt.err (!%p3571_p7)
}
 0x9e4   :  { %2599 = dma.vmem_to_hbm [thread:$0]  %s2597_s22, 32, %s5194_s6, [#allocation3]  }
 0x9e5   :  { %3575 = dma.done.wait [#allocation3], 32  }
 0x9e6   :  { %3576 = vsyncadd [#allocation3], 4294967264 }
 0x9e7   :  { %2607 = vsyncpa [#allocation3], 1 }

</bundles_post_ra>
